<compile_context>
chip_gen: v6e
topology: v6e:2x2x1
jax: 0.10.0
libtpu: 0.0.40
codegen_flags: <defaults>
</compile_context>

<pallas_src>
import functools

import jax
import jax.numpy as jnp
from jax.experimental import pallas as pl
from jax.experimental.pallas import tpu as pltpu

SUB = 8


def _sigmoid(x):
    return 1.0 / (1.0 + jnp.exp(-x))


# ---------------------------------------------------------------------------
# wrapper-side helpers: align_corners=True interpolation matrices (tiny)
# ---------------------------------------------------------------------------
def _interp_weights(out_size, in_size):
    """Source index / fraction matching F.interpolate(..., align_corners=True)."""
    if in_size == 1 or out_size == 1:
        return (jnp.zeros((out_size,), jnp.int32),
                jnp.zeros((out_size,), jnp.float32))
    src = jnp.arange(out_size, dtype=jnp.float32) * ((in_size - 1) / (out_size - 1))
    i0 = jnp.clip(jnp.floor(src).astype(jnp.int32), 0, in_size - 2)
    return i0, src - i0.astype(jnp.float32)


def _interp_matrix(out_size, in_size, pad_rows_to=None):
    """Dense (out, in) bilinear interpolation matrix; rows >= out_size are zero."""
    i0, frac = _interp_weights(out_size, in_size)
    i1 = jnp.minimum(i0 + 1, in_size - 1)
    eye = jnp.eye(in_size, dtype=jnp.float32)
    m = eye[i0] * (1.0 - frac)[:, None] + eye[i1] * frac[:, None]
    if pad_rows_to is not None and pad_rows_to > out_size:
        m = jnp.pad(m, ((0, pad_rows_to - out_size), (0, 0)))
    return m


def _bilinear_resize_align_corners(x, out_h, out_w):
    """Reference-only gather+lerp upsample (torch F.interpolate semantics)."""
    b, c, in_h, in_w = x.shape
    x = x.astype(jnp.float32)
    if (in_h, in_w) == (out_h, out_w):
        return x
    h0, hf = _interp_weights(out_h, in_h)
    w0, wf = _interp_weights(out_w, in_w)
    h1 = jnp.minimum(h0 + 1, in_h - 1)
    w1 = jnp.minimum(w0 + 1, in_w - 1)
    rows = (x[:, :, h0, :] * (1.0 - hf)[None, None, :, None]
            + x[:, :, h1, :] * hf[None, None, :, None])
    return (rows[:, :, :, w0] * (1.0 - wf)[None, None, None, :]
            + rows[:, :, :, w1] * wf[None, None, None, :])


def _int_pow(x, k):
    """x**k for small non-negative integer k via repeated multiply (VPU only)."""
    if k == 0:
        return jnp.ones_like(x)
    result, base = None, x
    while k:
        if k & 1:
            result = base if result is None else result * base
        k >>= 1
        if k:
            base = base * base
    return result


# ---------------------------------------------------------------------------
# Pallas kernel: fused upsample (MXU) + logits-form focal loss + partial reduce
# ---------------------------------------------------------------------------
def _focal_kernel(*refs, n_stages, stage_weights, alpha, gamma,
                  th, h, w, rows_per_group, acc_rows, hard_targets):
    stage_refs = refs[:3 * n_stages]
    t_ref = refs[3 * n_stages]
    out_ref = refs[3 * n_stages + 1]
    acc_ref = refs[3 * n_stages + 2]

    g = pl.program_id(1)
    r = pl.program_id(2)

    @pl.when(r == 0)
    def _():
        acc_ref[...] = jnp.zeros_like(acc_ref)

    t = t_ref[...].astype(jnp.float32)                               # (th, w)

    loss = None
    for s in range(n_stages):
        p_ref = stage_refs[3 * s]
        wh_ref = stage_refs[3 * s + 1]
        ww_ref = stage_refs[3 * s + 2]

        # fused align_corners bilinear upsample (separable): (th,ih)@(ih,iw)@(iw,w)
        rows = jnp.dot(wh_ref[...], p_ref[...].astype(jnp.float32),
                       preferred_element_type=jnp.float32)           # (th, iw)
        x = jnp.dot(rows, ww_ref[...],
                    preferred_element_type=jnp.float32)              # (th, w) logits

        # BCE(sigmoid(x), t) in logits (softplus) form; per-class clamp at 100
        # reproduces torch.binary_cross_entropy's log clamp at -100.
        e = jnp.exp(-jnp.abs(x))                                     # EUP
        lse = jnp.log(1.0 + e)                                       # EUP
        nlog_p = jnp.minimum(lse + jnp.maximum(-x, 0.0), 100.0)      # -log(sigmoid(x))
        nlog_1mp = jnp.minimum(lse + jnp.maximum(x, 0.0), 100.0)     # -log(1-sigmoid(x))
        logpt = t * nlog_p + (1.0 - t) * nlog_1mp

        if hard_targets:
            # targets known {0,1}: pt via VPU lerp of sigmoid (reuses e), no extra exp
            inv = 1.0 / (1.0 + e)
            prob = jnp.where(x >= 0.0, inv, 1.0 - inv)
            pt = t * prob + (1.0 - t) * (1.0 - prob)
        else:
            pt = jnp.exp(-logpt)                                     # exact for soft targets

        one_m_pt = 1.0 - pt
        gf = float(gamma)
        if gf.is_integer() and 0 <= gf <= 16:
            focal = _int_pow(one_m_pt, int(gf))                      # VPU multiplies
        else:
            focal = one_m_pt ** jnp.float32(gamma)                   # pow -> EUP

        term = focal * logpt
        sw = float(stage_weights[s])
        if sw != 1.0:
            term = jnp.float32(sw) * term
        loss = term if loss is None else loss + term

    # alpha weighting (shared across stages) + ragged-tail row mask (no host padding)
    alpha_w = alpha * t + (1.0 - alpha) * (1.0 - t)
    row0 = (g * rows_per_group + r) * th
    row_ids = row0 + jax.lax.broadcasted_iota(jnp.int32, (th, w), 0)
    loss = jnp.where(row_ids < h, loss * alpha_w, 0.0)

    # sublane-folded accumulation: VPU adds only, no per-step cross-lane reduce
    part = loss[0:acc_rows, :]
    for k in range(1, th // acc_rows):
        part = part + loss[k * acc_rows:(k + 1) * acc_rows, :]
    acc_ref[...] += part

    @pl.when(r == pl.num_programs(2) - 1)
    def _():
        out_ref[...] = acc_ref[...]


# ---------------------------------------------------------------------------
# wrapper
# ---------------------------------------------------------------------------
def criterion_scaled_focal(preds, target, *, stages=2, alpha=0.25, gamma=2.0,
                           weight=1.0, row_block_bytes=1 << 20,
                           assume_hard_targets=False):
    """preds: list of (B, C, hp, wp) logit maps; target: (B, C, H, W). Scalar loss.

    Matches CriterionScaledFocal.forward: per-stage bilinear upsample
    (align_corners=True) + sigmoid + binary focal loss (mean), combined as
    loss1 + 0.4 * loss2.  Set assume_hard_targets=True only when target is {0,1}.
    """
    b, c, h, w = target.shape
    if len(preds) >= 2 and stages == 2:
        use_preds = list(preds[:2])
        stage_weights = (1.0, 0.4)
    else:
        use_preds = list(preds[:1])
        stage_weights = (1.0,)
    n_stages = len(use_preds)
    n = b * c

    # output-row tile: ~row_block_bytes of target per tile, multiple of 8 (or full H)
    th = max(SUB, min(h, row_block_bytes // max(1, w * 4)))
    if th >= h:
        th = h
    else:
        th = (th // SUB) * SUB
    r_total = -(-h // th)

    # split row tiles into 2 groups when B*C is small so both v7x cores stay busy
    g_groups = 2 if (n < 4 and r_total >= 2 and r_total % 2 == 0) else 1
    rows_per_group = r_total // g_groups
    h_pad = r_total * th                     # extra Wh rows are zero (masked anyway)

    acc_rows = SUB if th % SUB == 0 else th

    target3 = target.reshape(n, h, w)

    inputs, in_specs = [], []
    for p in use_preds:
        pb, pc, ih, iw = p.shape
        p3 = p.reshape(n, ih, iw)
        wh = _interp_matrix(h, ih, pad_rows_to=h_pad)     # (h_pad, ih)
        ww = _interp_matrix(w, iw).T                      # (iw, w)
        inputs += [p3, wh, ww]
        in_specs += [
            pl.BlockSpec((None, ih, iw), lambda nn, gg, rr: (nn, 0, 0)),
            pl.BlockSpec((th, ih),
                         lambda nn, gg, rr, _rpg=rows_per_group: (gg * _rpg + rr, 0)),
            pl.BlockSpec((iw, w), lambda nn, gg, rr: (0, 0)),
        ]
    inputs.append(target3)
    in_specs.append(pl.BlockSpec(
        (None, th, w),
        lambda nn, gg, rr, _rpg=rows_per_group: (nn, gg * _rpg + rr, 0)))

    kernel = functools.partial(
        _focal_kernel, n_stages=n_stages, stage_weights=stage_weights,
        alpha=float(alpha), gamma=float(gamma), th=th, h=h, w=w,
        rows_per_group=rows_per_group, acc_rows=acc_rows,
        hard_targets=bool(assume_hard_targets))

    partials = pl.pallas_call(
        kernel,
        out_shape=jax.ShapeDtypeStruct((n, g_groups, acc_rows, w), jnp.float32),
        grid_spec=pltpu.PrefetchScalarGridSpec(
            num_scalar_prefetch=0,
            grid=(n, g_groups, rows_per_group),
            in_specs=in_specs,
            out_specs=pl.BlockSpec((None, None, acc_rows, w),
                                   lambda nn, gg, rr: (nn, gg, 0, 0)),
            scratch_shapes=[pltpu.VMEM((acc_rows, w), jnp.float32)],
        ),
        compiler_params=pltpu.CompilerParams(
            dimension_semantics=("parallel", "parallel", "arbitrary"),
            vmem_limit_bytes=48 * 1024 * 1024),
    )(*inputs)

    total = jnp.sum(partials)
    return jnp.float32(weight) * total / jnp.float32(b * c * h * w)


# ---------------------------------------------------------------------------
# pure-JAX torch-faithful reference (gather+lerp upsample, sigmoid, clamped BCE)
# ---------------------------------------------------------------------------
def _reference_scaled_focal(preds, target, stages=2, alpha=0.25, gamma=2.0,
                            weight=1.0):
    b, c, h, w = target.shape

    def focal(y_pred, y_true):
        y_pred = y_pred.reshape(-1).astype(jnp.float32)
        y_true = y_true.reshape(-1).astype(jnp.float32)
        log_p = jnp.maximum(jnp.log(y_pred), -100.0)
        log_1mp = jnp.maximum(jnp.log(1.0 - y_pred), -100.0)
        logpt = -(y_true * log_p + (1.0 - y_true) * log_1mp)
        pt = jnp.exp(-logpt)
        loss = (1.0 - pt) ** gamma * logpt
        loss = loss * (alpha * y_true + (1.0 - alpha) * (1.0 - y_true))
        return weight * jnp.mean(loss)

    if len(preds) >= 2 and stages == 2:
        p0 = _sigmoid(_bilinear_resize_align_corners(preds[0], h, w))
        p1 = _sigmoid(_bilinear_resize_align_corners(preds[1], h, w))
        return focal(p0, target) + 0.4 * focal(p1, target)
    p0 = _sigmoid(_bilinear_resize_align_corners(preds[0], h, w))
    return focal(p0, target)


if __name__ == "__main__":
    key = jax.random.PRNGKey(0)
    keys = jax.random.split(key, 8)
    # tolerance absorbs MXU rounding of the fused f32 interpolation matmuls
    TOL = dict(rtol=5e-3, atol=1e-4)

    # case A: two-stage, single row tile per (b, c)
    b, c, h, w = 2, 1, 32, 256
    predsA = [jax.random.normal(keys[0], (b, c, 16, 128), jnp.float32),
              jax.random.normal(keys[1], (b, c, 8, 64), jnp.float32)]
    targetA = jax.random.bernoulli(keys[2], p=0.3, shape=(b, c, h, w)).astype(jnp.float32)
    outA = jax.block_until_ready(criterion_scaled_focal(predsA, targetA))
    refA = jax.block_until_ready(_reference_scaled_focal(predsA, targetA))
    assert jnp.allclose(outA, refA, **TOL), (outA, refA)

    # case A (hard-target fast path; targets are {0,1})
    outAh = jax.block_until_ready(
        criterion_scaled_focal(predsA, targetA, assume_hard_targets=True))
    assert jnp.allclose(outAh, refA, **TOL), (outAh, refA)

    # case B: single-stage, multiple row tiles with a ragged (masked) tail
    b, c, h, w = 1, 1, 40, 128
    predsB = [jax.random.normal(keys[3], (b, c, 20, 64), jnp.float32)]
    targetB = jax.random.bernoulli(keys[4], p=0.5, shape=(b, c, h, w)).astype(jnp.float32)
    outB = jax.block_until_ready(
        criterion_scaled_focal(predsB, targetB, stages=1, row_block_bytes=16 * w * 4))
    refB = jax.block_until_ready(_reference_scaled_focal(predsB, targetB, stages=1))
    assert jnp.allclose(outB, refB, **TOL), (outB, refB)

    # case C: two-stage, multi-channel, row tiles split into 2 parallel core groups
    b, c, h, w = 1, 2, 64, 128
    predsC = [jax.random.normal(keys[5], (b, c, 32, 64), jnp.float32),
              jax.random.normal(keys[6], (b, c, 16, 32), jnp.float32)]
    targetC = jax.random.bernoulli(keys[7], p=0.2, shape=(b, c, h, w)).astype(jnp.float32)
    outC = jax.block_until_ready(
        criterion_scaled_focal(predsC, targetC, row_block_bytes=16 * w * 4))
    refC = jax.block_until_ready(_reference_scaled_focal(predsC, targetC))
    assert jnp.allclose(outC, refC, **TOL), (outC, refC)

    print("KERNEL_OK")
</pallas_src>

<mosaic_0001>
module attributes {stable_mosaic.version = 11 : i64} {
  func.func @_focal_kernel(%arg0: i32, %arg1: i32, %arg2: i32, %arg3: memref<1x16x128xf32, #tpu.memory_space<vmem>>, %arg4: memref<32x16xf32, #tpu.memory_space<vmem>>, %arg5: memref<128x256xf32, #tpu.memory_space<vmem>>, %arg6: memref<1x8x64xf32, #tpu.memory_space<vmem>>, %arg7: memref<32x8xf32, #tpu.memory_space<vmem>>, %arg8: memref<64x256xf32, #tpu.memory_space<vmem>>, %arg9: memref<1x32x256xf32, #tpu.memory_space<vmem>>, %arg10: memref<1x1x8x256xf32, #tpu.memory_space<vmem>>, %arg11: memref<8x256xf32, #tpu.memory_space<vmem>>) attributes {dimension_semantics = [#tpu.dimension_semantics<parallel>, #tpu.dimension_semantics<parallel>, #tpu.dimension_semantics<arbitrary>], iteration_bounds = array<i64: 2, 1, 1>, scalar_prefetch = 0 : i64, scratch_operands = 1 : i64, tpu.core_type = #tpu.core_type<tc>, window_params = [{transform_indices = @transform_0, window_bounds = array<i64: 1, 16, 128>}, {transform_indices = @transform_1, window_bounds = array<i64: 32, 16>}, {pipeline_mode = #tpu.pipeline_mode<synchronous>, transform_indices = @transform_2, window_bounds = array<i64: 128, 256>}, {transform_indices = @transform_3, window_bounds = array<i64: 1, 8, 64>}, {transform_indices = @transform_4, window_bounds = array<i64: 32, 8>}, {pipeline_mode = #tpu.pipeline_mode<synchronous>, transform_indices = @transform_5, window_bounds = array<i64: 64, 256>}, {transform_indices = @transform_6, window_bounds = array<i64: 1, 32, 256>}, {transform_indices = @transform_7, window_bounds = array<i64: 1, 1, 8, 256>}]} {
    %c0_i32 = arith.constant 0 : i32
    %0 = arith.cmpi eq, %arg2, %c0_i32 : i32
    %1 = arith.extui %0 : i1 to i32
    %c0_i32_0 = arith.constant 0 : i32
    %2 = arith.cmpi ne, %1, %c0_i32_0 : i32
    scf.if %2 {
      %cst_52 = arith.constant 0.000000e+00 : f32
      %113 = vector.broadcast %cst_52 : f32 to vector<8x256xf32>
      %c0_53 = arith.constant 0 : index
      %c0_54 = arith.constant 0 : index
      %114 = vector.load %arg11[%c0_53, %c0_54] : memref<8x256xf32, #tpu.memory_space<vmem>>, vector<8x256xf32>
      tpu.vector_store %arg11[%c0_53, %c0_54], %113 {strides = array<i32>} : memref<8x256xf32, #tpu.memory_space<vmem>>, vector<8x256xf32>,
    } else {
    }
    %c0 = arith.constant 0 : index
    %c0_1 = arith.constant 0 : index
    %c0_2 = arith.constant 0 : index
    %3 = vector.load %arg9[%c0, %c0_1, %c0_2] : memref<1x32x256xf32, #tpu.memory_space<vmem>>, vector<1x32x256xf32>
    %4 = vector.shape_cast %3 : vector<1x32x256xf32> to vector<32x256xf32>
    %c0_3 = arith.constant 0 : index
    %c0_4 = arith.constant 0 : index
    %5 = vector.load %arg4[%c0_3, %c0_4] : memref<32x16xf32, #tpu.memory_space<vmem>>, vector<32x16xf32>
    %c0_5 = arith.constant 0 : index
    %c0_6 = arith.constant 0 : index
    %c0_7 = arith.constant 0 : index
    %6 = vector.load %arg3[%c0_5, %c0_6, %c0_7] : memref<1x16x128xf32, #tpu.memory_space<vmem>>, vector<1x16x128xf32>
    %7 = vector.shape_cast %6 : vector<1x16x128xf32> to vector<16x128xf32>
    %cst = arith.constant dense<0.000000e+00> : vector<32x128xf32>
    %8 = tpu.matmul %5, %7, %cst {dimension_numbers = #tpu.dot_dimension_numbers<[1], [0], [0], [1], [0, 0, 1, 1], [], []>} : vector<32x16xf32>, vector<16x128xf32>, vector<32x128xf32> -> vector<32x128xf32>
    %c0_8 = arith.constant 0 : index
    %c0_9 = arith.constant 0 : index
    %9 = vector.load %arg5[%c0_8, %c0_9] : memref<128x256xf32, #tpu.memory_space<vmem>>, vector<128x256xf32>
    %cst_10 = arith.constant dense<0.000000e+00> : vector<32x256xf32>
    %10 = tpu.matmul %8, %9, %cst_10 {dimension_numbers = #tpu.dot_dimension_numbers<[1], [0], [0], [1], [0, 0, 1, 1], [], []>} : vector<32x128xf32>, vector<128x256xf32>, vector<32x256xf32> -> vector<32x256xf32>
    %11 = math.absf %10 : vector<32x256xf32>
    %cst_11 = arith.constant 0.000000e+00 : f32
    %12 = vector.broadcast %cst_11 : f32 to vector<32x256xf32>
    %13 = arith.subf %12, %11 : vector<32x256xf32>
    %14 = math.exp %13 : vector<32x256xf32>
    %cst_12 = arith.constant 1.000000e+00 : f32
    %15 = vector.broadcast %cst_12 : f32 to vector<32x256xf32>
    %16 = arith.addf %15, %14 : vector<32x256xf32>
    %17 = math.log %16 : vector<32x256xf32>
    %cst_13 = arith.constant 0.000000e+00 : f32
    %18 = vector.broadcast %cst_13 : f32 to vector<32x256xf32>
    %19 = arith.subf %18, %10 : vector<32x256xf32>
    %cst_14 = arith.constant 0.000000e+00 : f32
    %20 = vector.broadcast %cst_14 : f32 to vector<32x256xf32>
    %21 = arith.maximumf %19, %20 : vector<32x256xf32>
    %22 = arith.addf %17, %21 : vector<32x256xf32>
    %cst_15 = arith.constant 1.000000e+02 : f32
    %23 = vector.broadcast %cst_15 : f32 to vector<32x256xf32>
    %24 = arith.minimumf %22, %23 : vector<32x256xf32>
    %cst_16 = arith.constant 0.000000e+00 : f32
    %25 = vector.broadcast %cst_16 : f32 to vector<32x256xf32>
    %26 = arith.maximumf %10, %25 : vector<32x256xf32>
    %27 = arith.addf %17, %26 : vector<32x256xf32>
    %cst_17 = arith.constant 1.000000e+02 : f32
    %28 = vector.broadcast %cst_17 : f32 to vector<32x256xf32>
    %29 = arith.minimumf %27, %28 : vector<32x256xf32>
    %30 = arith.mulf %4, %24 : vector<32x256xf32>
    %cst_18 = arith.constant 1.000000e+00 : f32
    %31 = vector.broadcast %cst_18 : f32 to vector<32x256xf32>
    %32 = arith.subf %31, %4 : vector<32x256xf32>
    %33 = arith.mulf %32, %29 : vector<32x256xf32>
    %34 = arith.addf %30, %33 : vector<32x256xf32>
    %cst_19 = arith.constant 0.000000e+00 : f32
    %35 = vector.broadcast %cst_19 : f32 to vector<32x256xf32>
    %36 = arith.subf %35, %34 : vector<32x256xf32>
    %37 = math.exp %36 : vector<32x256xf32>
    %cst_20 = arith.constant 1.000000e+00 : f32
    %38 = vector.broadcast %cst_20 : f32 to vector<32x256xf32>
    %39 = arith.subf %38, %37 : vector<32x256xf32>
    %40 = arith.mulf %39, %39 : vector<32x256xf32>
    %41 = arith.mulf %40, %34 : vector<32x256xf32>
    %c0_21 = arith.constant 0 : index
    %c0_22 = arith.constant 0 : index
    %42 = vector.load %arg7[%c0_21, %c0_22] : memref<32x8xf32, #tpu.memory_space<vmem>>, vector<32x8xf32>
    %c0_23 = arith.constant 0 : index
    %c0_24 = arith.constant 0 : index
    %c0_25 = arith.constant 0 : index
    %43 = vector.load %arg6[%c0_23, %c0_24, %c0_25] : memref<1x8x64xf32, #tpu.memory_space<vmem>>, vector<1x8x64xf32>
    %44 = vector.shape_cast %43 : vector<1x8x64xf32> to vector<8x64xf32>
    %cst_26 = arith.constant dense<0.000000e+00> : vector<32x64xf32>
    %45 = tpu.matmul %42, %44, %cst_26 {dimension_numbers = #tpu.dot_dimension_numbers<[1], [0], [0], [1], [0, 0, 1, 1], [], []>} : vector<32x8xf32>, vector<8x64xf32>, vector<32x64xf32> -> vector<32x64xf32>
    %c0_27 = arith.constant 0 : index
    %c0_28 = arith.constant 0 : index
    %46 = vector.load %arg8[%c0_27, %c0_28] : memref<64x256xf32, #tpu.memory_space<vmem>>, vector<64x256xf32>
    %cst_29 = arith.constant dense<0.000000e+00> : vector<32x256xf32>
    %47 = tpu.matmul %45, %46, %cst_29 {dimension_numbers = #tpu.dot_dimension_numbers<[1], [0], [0], [1], [0, 0, 1, 1], [], []>} : vector<32x64xf32>, vector<64x256xf32>, vector<32x256xf32> -> vector<32x256xf32>
    %48 = math.absf %47 : vector<32x256xf32>
    %cst_30 = arith.constant 0.000000e+00 : f32
    %49 = vector.broadcast %cst_30 : f32 to vector<32x256xf32>
    %50 = arith.subf %49, %48 : vector<32x256xf32>
    %51 = math.exp %50 : vector<32x256xf32>
    %cst_31 = arith.constant 1.000000e+00 : f32
    %52 = vector.broadcast %cst_31 : f32 to vector<32x256xf32>
    %53 = arith.addf %52, %51 : vector<32x256xf32>
    %54 = math.log %53 : vector<32x256xf32>
    %cst_32 = arith.constant 0.000000e+00 : f32
    %55 = vector.broadcast %cst_32 : f32 to vector<32x256xf32>
    %56 = arith.subf %55, %47 : vector<32x256xf32>
    %cst_33 = arith.constant 0.000000e+00 : f32
    %57 = vector.broadcast %cst_33 : f32 to vector<32x256xf32>
    %58 = arith.maximumf %56, %57 : vector<32x256xf32>
    %59 = arith.addf %54, %58 : vector<32x256xf32>
    %cst_34 = arith.constant 1.000000e+02 : f32
    %60 = vector.broadcast %cst_34 : f32 to vector<32x256xf32>
    %61 = arith.minimumf %59, %60 : vector<32x256xf32>
    %cst_35 = arith.constant 0.000000e+00 : f32
    %62 = vector.broadcast %cst_35 : f32 to vector<32x256xf32>
    %63 = arith.maximumf %47, %62 : vector<32x256xf32>
    %64 = arith.addf %54, %63 : vector<32x256xf32>
    %cst_36 = arith.constant 1.000000e+02 : f32
    %65 = vector.broadcast %cst_36 : f32 to vector<32x256xf32>
    %66 = arith.minimumf %64, %65 : vector<32x256xf32>
    %67 = arith.mulf %4, %61 : vector<32x256xf32>
    %cst_37 = arith.constant 1.000000e+00 : f32
    %68 = vector.broadcast %cst_37 : f32 to vector<32x256xf32>
    %69 = arith.subf %68, %4 : vector<32x256xf32>
    %70 = arith.mulf %69, %66 : vector<32x256xf32>
    %71 = arith.addf %67, %70 : vector<32x256xf32>
    %cst_38 = arith.constant 0.000000e+00 : f32
    %72 = vector.broadcast %cst_38 : f32 to vector<32x256xf32>
    %73 = arith.subf %72, %71 : vector<32x256xf32>
    %74 = math.exp %73 : vector<32x256xf32>
    %cst_39 = arith.constant 1.000000e+00 : f32
    %75 = vector.broadcast %cst_39 : f32 to vector<32x256xf32>
    %76 = arith.subf %75, %74 : vector<32x256xf32>
    %77 = arith.mulf %76, %76 : vector<32x256xf32>
    %78 = arith.mulf %77, %71 : vector<32x256xf32>
    %cst_40 = arith.constant 4.000000e-01 : f32
    %79 = vector.broadcast %cst_40 : f32 to vector<32x256xf32>
    %80 = arith.mulf %79, %78 : vector<32x256xf32>
    %81 = arith.addf %41, %80 : vector<32x256xf32>
    %cst_41 = arith.constant 2.500000e-01 : f32
    %82 = vector.broadcast %cst_41 : f32 to vector<32x256xf32>
    %83 = arith.mulf %82, %4 : vector<32x256xf32>
    %cst_42 = arith.constant 1.000000e+00 : f32
    %84 = vector.broadcast %cst_42 : f32 to vector<32x256xf32>
    %85 = arith.subf %84, %4 : vector<32x256xf32>
    %cst_43 = arith.constant 7.500000e-01 : f32
    %86 = vector.broadcast %cst_43 : f32 to vector<32x256xf32>
    %87 = arith.mulf %86, %85 : vector<32x256xf32>
    %88 = arith.addf %83, %87 : vector<32x256xf32>
    %c1_i32 = arith.constant 1 : i32
    %89 = arith.muli %arg1, %c1_i32 : i32
    %90 = arith.addi %89, %arg2 : i32
    %c32_i32 = arith.constant 32 : i32
    %91 = arith.muli %90, %c32_i32 : i32
    %92 = tpu.iota {dimensions = array<i32: 0>} : vector<32x256xi32>
    %93 = vector.broadcast %91 : i32 to vector<32x256xi32>
    %94 = arith.addi %93, %92 : vector<32x256xi32>
    %c32_i32_44 = arith.constant 32 : i32
    %95 = vector.broadcast %c32_i32_44 : i32 to vector<32x256xi32>
    %96 = arith.cmpi slt, %94, %95 : vector<32x256xi32>
    %97 = arith.mulf %81, %88 : vector<32x256xf32>
    %cst_45 = arith.constant 0.000000e+00 : f32
    %98 = vector.broadcast %cst_45 : f32 to vector<32x256xf32>
    %99 = arith.select %96, %97, %98 : vector<32x256xi1>, vector<32x256xf32>
    %100 = vector.extract_strided_slice %99 {offsets = [0, 0], sizes = [8, 256], strides = [1, 1]} : vector<32x256xf32> to vector<8x256xf32>
    %101 = vector.extract_strided_slice %99 {offsets = [8, 0], sizes = [8, 256], strides = [1, 1]} : vector<32x256xf32> to vector<8x256xf32>
    %102 = arith.addf %100, %101 : vector<8x256xf32>
    %103 = vector.extract_strided_slice %99 {offsets = [16, 0], sizes = [8, 256], strides = [1, 1]} : vector<32x256xf32> to vector<8x256xf32>
    %104 = arith.addf %102, %103 : vector<8x256xf32>
    %105 = vector.extract_strided_slice %99 {offsets = [24, 0], sizes = [8, 256], strides = [1, 1]} : vector<32x256xf32> to vector<8x256xf32>
    %106 = arith.addf %104, %105 : vector<8x256xf32>
    %c0_46 = arith.constant 0 : index
    %c0_47 = arith.constant 0 : index
    %107 = vector.load %arg11[%c0_46, %c0_47] : memref<8x256xf32, #tpu.memory_space<vmem>>, vector<8x256xf32>
    %108 = arith.addf %107, %106 : vector<8x256xf32>
    %c0_48 = arith.constant 0 : index
    %c0_49 = arith.constant 0 : index
    %109 = vector.load %arg11[%c0_48, %c0_49] : memref<8x256xf32, #tpu.memory_space<vmem>>, vector<8x256xf32>
    tpu.vector_store %arg11[%c0_48, %c0_49], %108 {strides = array<i32>} : memref<8x256xf32, #tpu.memory_space<vmem>>, vector<8x256xf32>,
    %c0_i32_50 = arith.constant 0 : i32
    %110 = arith.cmpi eq, %arg2, %c0_i32_50 : i32
    %111 = arith.extui %110 : i1 to i32
    %c0_i32_51 = arith.constant 0 : i32
    %112 = arith.cmpi ne, %111, %c0_i32_51 : i32
    scf.if %112 {
      %c0_52 = arith.constant 0 : index
      %c0_53 = arith.constant 0 : index
      %113 = vector.load %arg11[%c0_52, %c0_53] : memref<8x256xf32, #tpu.memory_space<vmem>>, vector<8x256xf32>
      %c0_54 = arith.constant 0 : index
      %c0_55 = arith.constant 0 : index
      %c0_56 = arith.constant 0 : index
      %c0_57 = arith.constant 0 : index
      %114 = vector.load %arg10[%c0_54, %c0_55, %c0_56, %c0_57] : memref<1x1x8x256xf32, #tpu.memory_space<vmem>>, vector<1x1x8x256xf32>
      %115 = vector.shape_cast %114 : vector<1x1x8x256xf32> to vector<8x256xf32>
      %116 = vector.shape_cast %113 : vector<8x256xf32> to vector<1x1x8x256xf32>
      tpu.vector_store %arg10[%c0_54, %c0_55, %c0_56, %c0_57], %116 {strides = array<i32>} : memref<1x1x8x256xf32, #tpu.memory_space<vmem>>, vector<1x1x8x256xf32>,
    } else {
    }
    return
  }
  func.func @transform_0(%arg0: i32, %arg1: i32, %arg2: i32) -> (i32, i32, i32) {
    %c0_i32 = arith.constant 0 : i32
    %c0_i32_0 = arith.constant 0 : i32
    %c0_i32_1 = arith.constant 0 : i32
    return %arg0, %c0_i32, %c0_i32_0 : i32, i32, i32
  }
  func.func @transform_1(%arg0: i32, %arg1: i32, %arg2: i32) -> (i32, i32) {
    %c1_i32 = arith.constant 1 : i32
    %0 = arith.muli %arg1, %c1_i32 : i32
    %1 = arith.addi %0, %arg2 : i32
    %c0_i32 = arith.constant 0 : i32
    %c0_i32_0 = arith.constant 0 : i32
    return %1, %c0_i32 : i32, i32
  }
  func.func @transform_2(%arg0: i32, %arg1: i32, %arg2: i32) -> (i32, i32) {
    %c0_i32 = arith.constant 0 : i32
    %c0_i32_0 = arith.constant 0 : i32
    %c0_i32_1 = arith.constant 0 : i32
    return %c0_i32, %c0_i32_0 : i32, i32
  }
  func.func @transform_3(%arg0: i32, %arg1: i32, %arg2: i32) -> (i32, i32, i32) {
    %c0_i32 = arith.constant 0 : i32
    %c0_i32_0 = arith.constant 0 : i32
    %c0_i32_1 = arith.constant 0 : i32
    return %arg0, %c0_i32, %c0_i32_0 : i32, i32, i32
  }
  func.func @transform_4(%arg0: i32, %arg1: i32, %arg2: i32) -> (i32, i32) {
    %c1_i32 = arith.constant 1 : i32
    %0 = arith.muli %arg1, %c1_i32 : i32
    %1 = arith.addi %0, %arg2 : i32
    %c0_i32 = arith.constant 0 : i32
    %c0_i32_0 = arith.constant 0 : i32
    return %1, %c0_i32 : i32, i32
  }
  func.func @transform_5(%arg0: i32, %arg1: i32, %arg2: i32) -> (i32, i32) {
    %c0_i32 = arith.constant 0 : i32
    %c0_i32_0 = arith.constant 0 : i32
    %c0_i32_1 = arith.constant 0 : i32
    return %c0_i32, %c0_i32_0 : i32, i32
  }
  func.func @transform_6(%arg0: i32, %arg1: i32, %arg2: i32) -> (i32, i32, i32) {
    %c1_i32 = arith.constant 1 : i32
    %0 = arith.muli %arg1, %c1_i32 : i32
    %1 = arith.addi %0, %arg2 : i32
    %c0_i32 = arith.constant 0 : i32
    %c0_i32_0 = arith.constant 0 : i32
    return %arg0, %1, %c0_i32 : i32, i32, i32
  }
  func.func @transform_7(%arg0: i32, %arg1: i32, %arg2: i32) -> (i32, i32, i32, i32) {
    %c0_i32 = arith.constant 0 : i32
    %c0_i32_0 = arith.constant 0 : i32
    %c0_i32_1 = arith.constant 0 : i32
    return %arg0, %arg1, %c0_i32, %c0_i32_0 : i32, i32, i32, i32
  }
}

</mosaic_0001>

<bundles_post_ra>
// kernel: tpu_custom_call.1
= control target key start
LH: loop header
LB: loop body
LE: loop exit
PB: predicated region body
PF: predicated region fallthrough
CT: control target
= control target key end

     0   :  { %s2579_s0 = inlined_call_operand.vmem [shape: f32[2,16,128], index: 0, kind: input, shape index: {}]   ;;  %s2580_s1 = inlined_call_operand.vmem [shape: f32[32,16], index: 1, kind: input, shape index: {}]   ;;  %s2581_s2 = inlined_call_operand.hbm [shape: f32[128,256], index: 2, kind: input, shape index: {}]   ;;  %s2582_s3 = inlined_call_operand.vmem [shape: f32[2,8,64], index: 3, kind: input, shape index: {}]   ;;  %s2583_s4 = inlined_call_operand.vmem [shape: f32[32,8], index: 4, kind: input, shape index: {}]   ;;  %s2584_s5 = inlined_call_operand.hbm [shape: f32[64,256], index: 5, kind: input, shape index: {}]   ;;  %s2585_s6 = inlined_call_operand.hbm [shape: f32[2,32,256], index: 6, kind: input, shape index: {}]   ;;  %s2586_s7 = inlined_call_operand.hbm [shape: f32[2,1,8,256], index: 7, kind: output, shape index: {}]  }
   0x1   :  { %2599 = sst [smem:[#allocation21_spill]] %s2581_s2 }
   0x2   :  { %2600 = sst [smem:[#allocation22_spill]] %s2584_s5 }
   0x3   :  { %2601 = sst [smem:[#allocation23_spill]] %s2586_s7 }
   0x4   :  { %12 = vsyncpa [#allocation4], 0 }
   0x5   :  { %13 = vsyncpa [#allocation7], 0 }
   0x6   :  { %14 = vsyncpa [#allocation5], 0 }
   0x7   :  { %16 = vsyncpa [#allocation5 + $0x1], 0  ;;  %s2022_s24 = smov 0   ;;  %s2024_s25 = smov 0  }
   0x8   :  { %s2026_s26 = smov 0   ;;  %s2028_s27 = smov 0  }
   0x9   :  { %s2030_s28 = smov 0   ;;  %s2032_s29 = smov 0  }
   0xa LB: > { %2602 = sst [smem:[#allocation14_spill]] %s1953_s24  ;;  %s2053_s30 = sadd.s32 4294967295, %s1973_s29   ;;  %s1973_s29 = sphi %s2032_s29, %s22_s29   ;;  %s1969_s28 = sphi %s2030_s28, %s2653_s28   ;;  %s1965_s27 = sphi %s2028_s27, %s2652_s27   ;;  %s1961_s26 = sphi %s2026_s26, %s2651_s26   ;;  %s1957_s25 = sphi %s2024_s25, %s2650_s25   ;;  %s1953_s24 = sphi %s2022_s24, %s2649_s24  }
   0xb   : > { %2603 = sst [smem:[#allocation15_spill]] %s1973_s29  ;;  %s1556_s8 = sadd.s32 4294967294, %s1973_s29  }
   0xc   : > { %p209_p0 = scmp.ne.s32.totalorder %s1961_s26, %s1957_s25  ;;  %p210_p1 = scmp.eq.s32.totalorder %s1973_s29, 0 }
   0xd   : > { %p215_p2 = scmp.ne.s32.totalorder %s1957_s25, %s1953_s24  ;;  %p2587_p3 = scmp.eq.s32.totalorder %s2053_s30, 0 }
   0xe   : > { %p2062_p4 = por %p210_p1, %p209_p0  ;;  %p241_p5 = scmp.eq.s32.totalorder %s2053_s30, 1 }
   0xf   : > { %p2069_p6 = por %p2587_p3, %p215_p2  ;;  %p247_p7 = scmp.eq.s32.totalorder %s1556_s8, 1 }
  0x10   : > { %p2073_p8 = por %p241_p5, %p209_p0  ;;  %p1557_p9 = scmp.ge.s32.totalorder %s1973_s29, 1 }
  0x11   : > { %p2078_p10 = por %p247_p7, %p215_p2  ;;  %p254_p11 = scmp.lt.s32.totalorder %s1973_s29, 3 }
  0x12   : > { %s2606_s11 = scalar_select %p2073_p8, 1, 0 }
  0x13   : > { %s2607_s12 = scalar_select %p2078_p10, 1, 0 }
  0x14   : > { %p2083_p12 = pnand %p1557_p9, %p254_p11  ;;  %s1975_s14 = smov [#allocation3]  }
  0x15   : > { %2608 = sst [smem:[#allocation16_spill]] %s2607_s12  ;;  %s277_s15 = sshll.u32 %s1975_s14, 4  ;;  %s278_s15 = int_to_ptr.vmem [resolvable:$true] %s277_s15 }
  0x16   : > { %p1635_p13 = pneg %p2083_p12  ;;  %p1652_p1 = scmp.lt.s32.totalorder %s1973_s29, 2 }
  0x17   : > { %s1976_s18 = smov [#allocation6]   ;;  %s1816_s20 = scalar_lea.vmem %s278_s15, 4096 }
  0x18   : > { %p2093_p5 = pnand %p1635_p13, %p2587_p3  ;;  %p2099_p2 = pnand %p1652_p1, %p2062_p4 }
  0x19   : > { %s301_s19 = sshll.u32 %s1976_s18, 4  ;;  %p1817_p9 = scmp.ne.s32.totalorder %s278_s15, %s1816_s20  ;;  %s302_s19 = int_to_ptr.vmem [resolvable:$true] %s301_s19 }
  0x1a   : > { %p1807_p7 = pneg %p2093_p5  ;;  %p1824_p0 = scmp.lt.s32.totalorder %s278_s15, %s278_s15 }
  0x1b   : > { %p1825_p3 = scmp.lt.s32.totalorder %s1816_s20, %s1816_s20 }
  0x1c   : > { %p1819_p11 = pnand %p1817_p9, %p1807_p7 }
  0x1d   : > { %p1826_p10 = por %p1825_p3, %p1824_p0 }
  0x1e   : > { %p1820_p13 = pneg %p1819_p11 }
  0x20   : > { %p1827_p8 = pnand %p1826_p10, %p1820_p13 }
  0x22   : > { %1830 = shalt.err (!%p1827_p8)
}
  0x23   : > { %s2592_s21 = smov 256   ;;  %s2593_s22 = smov 16  }
  0x24   : > { %s2612_s2 = sld [smem:[#allocation21_spill]]  ;;  %s1842_s9 = scalar_lea.vmem %s302_s19, 2048 }
  0x25   : > { %p1843_p4 = scmp.ne.s32.totalorder %s302_s19, %s1842_s9  ;;  %p1850_p10 = scmp.lt.s32.totalorder %s302_s19, %s302_s19 }
  0x26   : > { %p1851_p8 = scmp.lt.s32.totalorder %s1842_s9, %s1842_s9 }
  0x27   : > { %p1845_p1 = pnand %p1843_p4, %p1807_p7 }
  0x28   : > { %p1852_p0 = por %p1851_p8, %p1850_p10 }
  0x29   : > { %p1846_p3 = pneg %p1845_p1 }
  0x2a   : > { %1638 = dma.hbm_to_vmem [thread:$0]  (!%p2093_p5), %s2612_s2, 4096, %s278_s15, [#allocation4], %s2592_s21, %s2592_s21, %s2593_s22  }
  0x2b   : > { %p1853_p9 = pnand %p1852_p0, %p1846_p3 }
  0x2d   : > { %1856 = shalt.err (!%p1853_p9)
}
  0x2e   : > { %s2613_s5 = sld [smem:[#allocation22_spill]]  ;;  %s202_s15 = sadd.s32 1, %s1961_s26 }
  0x2f   : > { %s41_s20 = sadd.s32 1, %s1969_s28  ;;  %s330_s23 = sand.u32 1, %s1973_s29  }
  0x30   : > { %p43_p7 = scmp.ge.s32.totalorder %s41_s20, 2  ;;  %s332_s16 = sand.u32 1, %s1961_s26  }
  0x31   : > { %s1591_s8 = sshll.u32 %s1969_s28, 10  ;;  %s1563_s9 = sshll.u32 %s332_s16, 6 }
  0x32   : > { %s2655_s20 = smov (%p43_p7, %s41_s20), 0  ;;  %s344_s2 = scalar_lea.hbm %s2585_s6, %s1591_s8 }
  0x33   : > { %s197_s12 = ssub.s32 %s1969_s28, %s2655_s20  ;;  %s334_s24 = scalar_lea.vmem [#allocation8], %s1563_s9 }
  0x34   : > { %1641 = dma.hbm_to_vmem [thread:$0]  (!%p2093_p5), %s2613_s5, 2048, %s302_s19, [#allocation7], %s2592_s21, %s2592_s21, %s2593_s22  }
  0x35   : > { %p200_p11 = scmp.eq.s32.totalorder %s197_s12, 0  ;;  %s345_s7 = sshll.u32 %s334_s24, 4  ;;  %s346_s7 = int_to_ptr.vmem [resolvable:$true] %s345_s7 }
  0x36   : > { %s331_s21 = scalar_lea.sflag [#allocation4], %s330_s23  ;;  %p1859_p5 = pneg %p2099_p2 }
  0x37   : > { %s2140_s19 = scalar_select %p200_p11, %s1961_s26, %s202_s15  }
  0x38   : > { %s1870_s22 = scalar_lea.vmem %s346_s7, 1024  ;;  %s1979_s5 = smov [#allocation8]  }
  0x39   : > { %p1871_p13 = scmp.ne.s32.totalorder %s346_s7, %s1870_s22  ;;  %s1875_s16 = sshll.u32 %s1979_s5, 4  ;;  %s1876_s16 = int_to_ptr.vmem [resolvable:$false] %s1875_s16 }
  0x3a   : > { %s1877_s29 = scalar_lea.vmem %s1876_s16, 2048  ;;  %p1878_p3 = scmp.lt.s32.totalorder %s346_s7, %s1876_s16 }
  0x3b   : > { %p1873_p4 = pnand %p1871_p13, %p1859_p5  ;;  %p1879_p10 = scmp.lt.s32.totalorder %s1877_s29, %s1870_s22 }
  0x3d   : > { %p1874_p1 = pneg %p1873_p4  ;;  %p1880_p8 = por %p1879_p10, %p1878_p3 }
  0x3f   : > { %p1881_p0 = pnand %p1880_p8, %p1874_p1 }
  0x41   : > { %1884 = shalt.err (!%p1881_p0)
}
  0x42   : > { %s2614_s24 = smov 16   ;;  %s2615_s12 = smov 256  }
  0x43   : > { %1645 = dma.hbm_to_vmem [thread:$0]  (!%p2099_p2), %s344_s2, 1024, %s346_s7, %s331_s21, %s2615_s12, %s2615_s12, %s2614_s24  }
  0x44   : > { %357 = sbr.rel (%p2083_p12) target bundleno = 622 (0x26e), region = 48 }
  0x49   : > { %p2616_p9 = scmp.eq.s32.totalorder %s2053_s30, 0 }
  0x4b   : > { %1936 = dma.done.wait (%p2616_p9), [#allocation4], 4096   ;;  %p2617_p7 = pmov %p2616_p9 }
  0x4d   : > { %1938 = vsyncadd (%p2617_p7), [#allocation4], 4294963200  ;;  %p2618_p11 = pmov %p2617_p7 }
  0x4e   : > { %p2619_p5 = pmov %p2617_p7 }
  0x4f   : > { %1940 = dma.done.wait (%p2618_p11), [#allocation7], 2048  }
  0x50   : > { %1942 = vsyncadd (%p2619_p5), [#allocation7], 4294965248  ;;  %s367_s5 = sand.u32 1, %s2053_s30   ;;  %s2161_s2 = sand.u32 1, %s1957_s25  }
  0x51   : > { %s1569_s7 = sshll.u32 %s2161_s2, 6  ;;  %s368_s29 = scalar_lea.sflag [#allocation4], %s367_s5 }
  0x52   : > { %s2164_s13 = scalar_lea.vmem [#allocation8], %s1569_s7 }
  0x53   : > { %1944 = dma.done.wait (%p2069_p6), %s368_s29, 1024  }
  0x54   : > { %1946 = vsyncadd (%p2069_p6), %s368_s29, 4294966272  ;;  %p423_p12 = scmp.lt.s32.totalorder %s1965_s27, 1  ;;  %vm470_vm0 = vcmask 130048   ;;  %v464_v2 = vld [vmem:[%s2580_s1] sm:$0xff]  ;;  %v465_v3 = vld [vmem:[%s2580_s1 + $0x8] sm:$0xff]  ;;  %vm886_vm1 = vcmask 64512  }
  0x55   : > { %1609 = vmatprep.mubr.msk.f32.mxu0 %vm470_vm0, %v464_v2  ;;  %v466_v5 = vld [vmem:[%s2580_s1 + $0x10] sm:$0xff]  ;;  %v599_v6 = vld [vmem:[#allocation3 + $0xf8] sm:$0xff]  ;;  %v597_v8 = vld [vmem:[#allocation3 + $0xe8] sm:$0xff]  ;;  %v1980_v51 = vmov 0.0   ;;  %vm1000_vm2 = vcmask 523264   ;;  %s2642_s12 = sld [smem:[#allocation23_spill]] }
  0x56   : > { %s424_s17 = scalar_select %p423_p12, %s1965_s27, 1  ;;  %600 = vmatprep.subr.mxu1 %v599_v6  ;;  %v598_v7 = vld [vmem:[#allocation3 + $0xf0] sm:$0xff]  ;;  %v467_v9 = vld [vmem:[%s2580_s1 + $0x18] sm:$0xff]  ;;  %v596_v10 = vld [vmem:[#allocation3 + $0xe0] sm:$0xff]  ;;  %664 = vmatprep.mubr.f32.mxu1 %v1980_v51 }
  0x57   : > { %v881_v11 = vld [vmem:[%s2583_s4] sm:$0xff]  ;;  %601 = vmatpush1.msra.mxu1 %v598_v7  ;;  %v595_v12 = vld [vmem:[#allocation3 + $0xd8] sm:$0xff]  ;;  %v594_v13 = vld [vmem:[#allocation3 + $0xd0] sm:$0xff]  ;;  %s1378_s7 = scalar_lea.sflag [#allocation5], %s2161_s2  ;;  %p2643_p2 = scmp.ne.s32.totalorder %s2606_s11, 0 }
  0x58   : > { %s1592_s21 = sshll.u32 %s424_s17, 4  ;;  %s1573_s22 = sshll.u32 %s424_s17, 3  ;;  %602 = vmatprep.subr.mxu1 %v597_v8  ;;  %v593_v14 = vld [vmem:[#allocation3 + $0xc8] sm:$0xff]  ;;  %v592_v16 = vld [vmem:[#allocation3 + $0xc0] sm:$0xff]  ;;  %v883_v17 = vld [vmem:[%s2583_s4 + $0x10] sm:$0xff] }
  0x59   : > { %s427_s23 = scalar_lea.vmem %s2579_s0, %s1592_s21  ;;  %s439_s14 = scalar_lea.vmem %s2582_s3, %s1573_s22  ;;  %603 = vmatpush1.msra.mxu1 %v596_v10  ;;  %v882_v15 = vld [vmem:[%s2583_s4 + $0x8] sm:$0xff]  ;;  %v591_v18 = vld [vmem:[#allocation3 + $0xb8] sm:$0xff]  ;;  %v590_v19 = vld [vmem:[#allocation3 + $0xb0] sm:$0xff] }
  0x5a   : > { %v469_v0 = vld [vmem:[%s427_s23 + $0x8] sm:$0xff]  ;;  %v468_v1 = vld [vmem:[%s427_s23] sm:$0xff]  ;;  %604 = vmatprep.subr.mxu1 %v595_v12  ;;  %v999_v20 = vld [vmem:[#allocation6 + $0x78] sm:$0xff] }
  0x5b   : > { %1605 = vmatprep.subr.mxu0 %v469_v0  ;;  %v885_v4 = vld [vmem:[%s439_s14] sm:$0xff]  ;;  %605 = vmatpush1.msra.mxu1 %v594_v13  ;;  %v589_v21 = vld [vmem:[#allocation3 + $0xa8] sm:$0xff]  ;;  %v998_v22 = vld [vmem:[#allocation6 + $0x70] sm:$0xff]  ;;  %s1593_s14 = sshll.u32 %s1965_s27, 8  ;;  %s1981_s27 = smov [#allocation9]  }
  0x5c   : > { %1606 = vmatpush3.msra.mxu0 %v469_v0  ;;  %606 = vmatprep.subr.mxu1 %v593_v14  ;;  %v884_v23 = vld [vmem:[%s2583_s4 + $0x18] sm:$0xff]  ;;  %v588_v24 = vld [vmem:[#allocation3 + $0xa0] sm:$0xff]  ;;  %v997_v26 = vld [vmem:[#allocation6 + $0x68] sm:$0xff]  ;;  %s2537_s5 = scalar_lea.hbm %s2642_s12, %s1593_s14  ;;  %s1889_s17 = sshll.u32 %s1981_s27, 4  ;;  %s1890_s17 = int_to_ptr.vmem [resolvable:$false] %s1889_s17 }
  0x5d   : > { %1607 = vmatprep.subr.mxu0 %v468_v1  ;;  %607 = vmatpush1.msra.mxu1 %v592_v16  ;;  %v587_v25 = vld [vmem:[#allocation3 + $0x98] sm:$0xff]  ;;  %v586_v27 = vld [vmem:[#allocation3 + $0x90] sm:$0xff]  ;;  %v996_v28 = vld [vmem:[#allocation6 + $0x60] sm:$0xff]  ;;  %s1891_s21 = scalar_lea.vmem %s1890_s17, 512 }
  0x5e   : > { %1608 = vmatpush3.msra.mxu0 %v468_v1  ;;  %608 = vmatprep.subr.mxu1 %v591_v18  ;;  %v585_v29 = vld [vmem:[#allocation3 + $0x88] sm:$0xff]  ;;  %v995_v30 = vld [vmem:[#allocation6 + $0x58] sm:$0xff]  ;;  %v584_v31 = vld [vmem:[#allocation3 + $0x80] sm:$0xff] }
  0x5f   : > { %1610 = vmatmul.mubr.msk.f32.vlgmr.msra.gmra.mxu0 %vm470_vm0, %v465_v3  ;;  %1615 = vmatprep.subr.mxu0 %v885_v4  ;;  %v583_v32 = vld [vmem:[#allocation3 + $0x78] sm:$0xff]  ;;  %v582_v33 = vld [vmem:[#allocation3 + $0x70] sm:$0xff]  ;;  %v581_v34 = vld [vmem:[#allocation3 + $0x68] sm:$0xff] }
  0x60   : > { %1616 = vmatpush3.msra.mxu0 %v885_v4  ;;  %1612 = vmatprep.mubr.msk.f32.mxu0 %vm470_vm0, %v466_v5  ;;  %v580_v35 = vld [vmem:[#allocation3 + $0x60] sm:$0xff]  ;;  %v579_v36 = vld [vmem:[#allocation3 + $0x58] sm:$0xff]  ;;  %v578_v37 = vld [vmem:[#allocation3 + $0x50] sm:$0xff] }
  0x61   : > { %609 = vmatpush1.msra.mxu1 %v590_v19  ;;  %1029 = vmatprep.subr.mxu0 %v999_v20  ;;  %v577_v38 = vld [vmem:[#allocation3 + $0x48] sm:$0xff]  ;;  %v576_v39 = vld [vmem:[#allocation3 + $0x40] sm:$0xff]  ;;  %v575_v40 = vld [vmem:[#allocation3 + $0x38] sm:$0xff] }
  0x62   : > { %610 = vmatprep.subr.mxu1 %v589_v21  ;;  %v574_v41 = vld [vmem:[#allocation3 + $0x30] sm:$0xff]  ;;  %v573_v42 = vld [vmem:[#allocation3 + $0x28] sm:$0xff]  ;;  %v572_v43 = vld [vmem:[#allocation3 + $0x20] sm:$0xff] }
  0x63   : > { %1613 = vmatmul.mubr.msk.f32.gmra.mxu0 %vm470_vm0, %v467_v9  ;;  %611 = vmatpush1.msra.mxu1 %v588_v24  ;;  %v571_v44 = vld [vmem:[#allocation3 + $0x18] sm:$0xff]  ;;  %v570_v45 = vld [vmem:[#allocation3 + $0x10] sm:$0xff]  ;;  %v569_v47 = vld [vmem:[#allocation3 + $0x8] sm:$0xff] }
  0x64   : > { %1617 = vmatprep.mubr.msk.f32.mxu0 %vm886_vm1, %v881_v11  ;;  %612 = vmatprep.subr.mxu1 %v587_v25  ;;  %v994_v46 = vld [vmem:[#allocation6 + $0x50] sm:$0xff]  ;;  %v993_v48 = vld [vmem:[#allocation6 + $0x48] sm:$0xff]  ;;  %v568_v49 = vld [vmem:[#allocation3] sm:$0xff] }
  0x65   : > { %613 = vmatpush1.msra.mxu1 %v586_v27  ;;  %v992_v50 = vld [vmem:[#allocation6 + $0x40] sm:$0xff]  ;;  %v991_v52 = vld [vmem:[#allocation6 + $0x38] sm:$0xff]  ;;  %v990_v53 = vld [vmem:[#allocation6 + $0x30] sm:$0xff] }
  0x66   : > { %614 = vmatprep.subr.mxu1 %v585_v29  ;;  %v989_v54 = vld [vmem:[#allocation6 + $0x28] sm:$0xff]  ;;  %v988_v55 = vld [vmem:[#allocation6 + $0x20] sm:$0xff]  ;;  %v987_v56 = vld [vmem:[#allocation6 + $0x18] sm:$0xff] }
  0x67   : > { %1618 = vmatmul.mubr.msk.f32.vlgmr.msra.gmra.mxu0 %vm886_vm1, %v882_v15  ;;  %615 = vmatpush1.msra.mxu1 %v584_v31  ;;  %v986_v57 = vld [vmem:[#allocation6 + $0x10] sm:$0xff]  ;;  %v985_v58 = vld [vmem:[#allocation6 + $0x8] sm:$0xff]  ;;  %v984_v59 = vld [vmem:[#allocation6] sm:$0xff] }
  0x68   : > { %1620 = vmatprep.mubr.msk.f32.mxu0 %vm886_vm1, %v883_v17  ;;  %1030 = vmatpush1.msra.mxu0 %v998_v22 }
  0x69   : > { %1031 = vmatprep.subr.mxu0 %v997_v26  ;;  %616 = vmatprep.subr.mxu1 %v583_v32 }
  0x6a   : > { %1032 = vmatpush1.msra.mxu0 %v996_v28  ;;  %617 = vmatpush1.msra.mxu1 %v582_v33 }
  0x6b   : > { %1621 = vmatmul.mubr.msk.f32.gmra.mxu0 %vm886_vm1, %v884_v23  ;;  %1033 = vmatprep.subr.mxu0 %v995_v30 }
  0x6c   : > { %618 = vmatprep.subr.mxu1 %v581_v34  ;;  %1034 = vmatpush1.msra.mxu0 %v994_v46 }
  0x6d   : > { %619 = vmatpush1.msra.mxu1 %v580_v35  ;;  %1035 = vmatprep.subr.mxu0 %v993_v48 }
  0x6e   : > { %620 = vmatprep.subr.mxu1 %v579_v36  ;;  %1036 = vmatpush1.msra.mxu0 %v992_v50 }
  0x6f   : > { %621 = vmatpush1.msra.mxu1 %v578_v37  ;;  %1077 = vmatprep.mubr.f32.mxu0 %v1980_v51 }
  0x70   : > { %622 = vmatprep.subr.mxu1 %v577_v38  ;;  %1037 = vmatprep.subr.mxu0 %v991_v52 }
  0x71   : > { %623 = vmatpush1.msra.mxu1 %v576_v39  ;;  %1038 = vmatpush1.msra.mxu0 %v990_v53 }
  0x72   : > { %624 = vmatprep.subr.mxu1 %v575_v40  ;;  %1039 = vmatprep.subr.mxu0 %v989_v54 }
  0x73   : > { %625 = vmatpush1.msra.mxu1 %v574_v41  ;;  %1040 = vmatpush1.msra.mxu0 %v988_v55  ;;  %v2249_v55 = vld [vmem:[%s2164_s13] sm:$0xff] }
  0x74   : > { %626 = vmatprep.subr.mxu1 %v573_v42  ;;  %1041 = vmatprep.subr.mxu0 %v987_v56  ;;  %v2252_v56 = vld [vmem:[%s2164_s13 + $0x8] sm:$0xff] }
  0x75   : > { %627 = vmatpush1.msra.mxu1 %v572_v43  ;;  %1042 = vmatpush1.msra.mxu0 %v986_v57 }
  0x76   : > { %628 = vmatprep.subr.mxu1 %v571_v44  ;;  %1043 = vmatprep.subr.mxu0 %v985_v58  ;;  %v2255_v58 = vld [vmem:[%s2164_s13 + $0x10] sm:$0xff] }
  0x77   : > { %629 = vmatpush1.msra.mxu1 %v570_v45  ;;  %1044 = vmatpush1.msra.mxu0 %v984_v59  ;;  %v2258_v59 = vld [vmem:[%s2164_s13 + $0x18] sm:$0xff] }
  0x78   : > { %630 = vmatprep.subr.mxu1 %v569_v47 }
  0x79   : > { %631 = vmatpush1.msra.mxu1 %v568_v49 }
 0x11f   : > { %v1611_v60 = vpop.f32.mrf.mxu0 }
 0x121   : > { %v549_v61 = vpop.f32.mrf.mxu0 }
 0x122   : > { %665 = vmatmul.mubr.f32.vlgmr.msra.gmra.mxu1 %v549_v61  ;;  %v2264_v61 = vld [vmem:[%s2164_s13 + $0x28] sm:$0xff] }
 0x123   : > { %v1614_v62 = vpop.f32.mrf.mxu0  ;;  %670 = vmatprep.mubr.f32.mxu1 %v1980_v51 }
 0x125   : > { %v559_v63 = vpop.f32.mrf.mxu0 }
 0x126   : > { %671 = vmatmul.mubr.f32.gmra.mxu1 %v1611_v60  ;;  %v2261_v60 = vld [vmem:[%s2164_s13 + $0x20] sm:$0xff] }
 0x127   : > { %v1619_v0 = vpop.f32.mrf.mxu0  ;;  %676 = vmatprep.mubr.f32.mxu1 %v1980_v51 }
 0x129   : > { %v965_v1 = vpop.f32.mrf.mxu0 }
 0x12a   : > { %677 = vmatmul.mubr.f32.gmra.mxu1 %v559_v63  ;;  %1582 = vmatmul.mubr.msk.f32.vlgmr.msra.gmra.mxu0 %vm1000_vm2, %v965_v1  ;;  %v2271_v1 = vsub.f32 1.0, %v2249_v55 }
 0x12b   : > { %682 = vmatprep.mubr.f32.mxu1 %v1980_v51  ;;  %1083 = vmatprep.mubr.f32.mxu0 %v1980_v51  ;;  %v1622_v2 = vpop.f32.mrf.mxu0 }
 0x12d   : > { %v975_v3 = vpop.f32.mrf.mxu0 }
 0x12e   : > { %683 = vmatmul.mubr.f32.gmra.mxu1 %v1614_v62  ;;  %1583 = vmatmul.mubr.msk.f32.gmra.mxu0 %vm1000_vm2, %v1619_v0  ;;  %v2267_v62 = vld [vmem:[%s2164_s13 + $0x30] sm:$0xff] }
 0x12f   : > { %1089 = vmatprep.mubr.f32.mxu0 %v1980_v51 }
 0x132   : > { %1584 = vmatmul.mubr.msk.f32.gmra.mxu0 %vm1000_vm2, %v975_v3 }
 0x133   : > { %1095 = vmatprep.mubr.f32.mxu0 %v1980_v51 }
 0x136   : > { %1585 = vmatmul.mubr.msk.f32.gmra.mxu0 %vm1000_vm2, %v1622_v2  ;;  %v2274_v2 = vsub.f32 1.0, %v2252_v56 }
 0x1e2   : > { %v2210_v4 = vpop.f32.mrf.mxu1 }
 0x1e3   : > { %v689_v5 = vand.u32 2147483647, %v2210_v4  ;;  %v745_v0 = vsub.f32 0.0, %v2210_v4 }
 0x1e4   : > { %v2213_v6 = vpop.f32.mrf.mxu1 }
 0x1e5   : > { %v697_v7 = vsub.f32 0.0, %v689_v5  ;;  %v690_v8 = vand.u32 2147483647, %v2213_v6  ;;  %v2277_v5 = vld [vmem:[%s2164_s13 + $0x38] sm:$0xff]  ;;  %s1570_s13 = sshll.u32 %s2161_s2, 4 }
 0x1e6   : > { %v2216_v9 = vpop.f32.mrf.mxu1  ;;  %s422_s18 = scalar_lea.vmem [#allocation9], %s1570_s13 }
 0x1e7   : > { %v705_v10 = vmul.f32 1.442695, %v697_v7  ;;  %v698_v11 = vsub.f32 0.0, %v690_v8  ;;  %v691_v14 = vand.u32 2147483647, %v2216_v9  ;;  %s1394_s10 = sshll.u32 %s422_s18, 4  ;;  %s1395_s10 = int_to_ptr.vmem [resolvable:$true] %s1394_s10 }
 0x1e8   : > { %v2218_v12 = vpop.f32.mrf.mxu1  ;;  %s1885_s29 = scalar_lea.vmem %s1395_s10, 256  ;;  %p1892_p1 = scmp.lt.s32.totalorder %s1395_s10, %s1890_s17 }
 0x1e9   : > { %1709 = vpow2.f32 %v705_v10  ;;  %v707_v16 = vmul.f32 1.442695, %v698_v11  ;;  %v699_v18 = vsub.f32 0.0, %v691_v14  ;;  %v692_v19 = vand.u32 2147483647, %v2218_v12  ;;  %p1886_p6 = scmp.ne.s32.totalorder %s1395_s10, %s1885_s29  ;;  %p1893_p3 = scmp.lt.s32.totalorder %s1891_s21, %s1885_s29 }
 0x1ea   : > { %v2220_v13 = vpop.f32.mrf.mxu0  ;;  %v2225_v17 = vpop.f32.mrf.mxu1  ;;  %v746_v10 = vsub.f32 0.0, %v2213_v6  ;;  %v2283_v11 = vsub.f32 1.0, %v2255_v58  ;;  %v2286_v14 = vsub.f32 1.0, %v2258_v59 }
 0x1eb   : > { %v693_v21 = vand.u32 2147483647, %v2225_v17  ;;  %1711 = vpow2.f32 %v707_v16  ;;  %v1102_v22 = vand.u32 2147483647, %v2220_v13  ;;  %v709_v24 = vmul.f32 1.442695, %v699_v18  ;;  %p1887_p13 = pnand %p1886_p6, %p2643_p2  ;;  %p1894_p10 = por %p1893_p3, %p1892_p1 }
 0x1ec   : > { %v2223_v15 = vpop.f32.mrf.mxu0  ;;  %v700_v25 = vsub.f32 0.0, %v692_v19  ;;  %v2236_v30 = vpop.f32.mrf.mxu1  ;;  %v747_v19 = vsub.f32 0.0, %v2216_v9 }
 0x1ed   : > { %v701_v26 = vsub.f32 0.0, %v693_v21  ;;  %v1103_v27 = vand.u32 2147483647, %v2223_v15  ;;  %v1110_v29 = vsub.f32 0.0, %v1102_v22  ;;  %1713 = vpow2.f32 %v709_v24  ;;  %p1888_p4 = pneg %p1887_p13 }
 0x1ee   : > { %v2228_v20 = vpop.f32.mrf.mxu0  ;;  %v711_v32 = vmul.f32 1.442695, %v700_v25  ;;  %v694_v35 = vand.u32 2147483647, %v2236_v30  ;;  %v2240_v38 = vpop.f32.mrf.mxu1  ;;  %v2290_v21 = vsub.f32 1.0, %v2261_v60  ;;  %v2293_v22 = vsub.f32 1.0, %v2264_v61 }
 0x1ef   : > { %v1104_v23 = vand.u32 2147483647, %v2228_v20  ;;  %v713_v34 = vmul.f32 1.442695, %v701_v26  ;;  %v1111_v36 = vsub.f32 0.0, %v1103_v27  ;;  %v777_v25 = vmax.f32 %v2210_v4, 0.0  ;;  %p1895_p8 = pnand %p1894_p10, %p1888_p4 }
 0x1f0   : > { %v2234_v28 = vpop.f32.mrf.mxu0  ;;  %v1118_v37 = vmul.f32 1.442695, %v1110_v29  ;;  %1715 = vpow2.f32 %v711_v32  ;;  %v702_v43 = vsub.f32 0.0, %v694_v35  ;;  %v2242_v46 = vpop.f32.mrf.mxu1  ;;  %v695_v48 = vand.u32 2147483647, %v2240_v38 }
 0x1f1   : > { %v1112_v31 = vsub.f32 0.0, %v1104_v23  ;;  %v1105_v33 = vand.u32 2147483647, %v2234_v28  ;;  %1717 = vpow2.f32 %v713_v34  ;;  %v1120_v44 = vmul.f32 1.442695, %v1111_v36 }
 0x1f2   : > { %1719 = vpow2.f32 %v1118_v37  ;;  %v715_v49 = vmul.f32 1.442695, %v702_v43  ;;  %v696_v50 = vand.u32 2147483647, %v2242_v46  ;;  %v703_v52 = vsub.f32 0.0, %v695_v48  ;;  %v2246_v53 = vpop.f32.mrf.mxu0 }
 0x1f3   : > { %v1113_v39 = vsub.f32 0.0, %v1105_v33  ;;  %v1122_v41 = vmul.f32 1.442695, %v1112_v31  ;;  %2620 = vst [vmem:[#allocation17_spill] sm:$0xff] %v2246_v53  ;;  %v2296_v23 = vsub.f32 1.0, %v2267_v62  ;;  %v748_v26 = vsub.f32 0.0, %v2218_v12 }
 0x1f4   : > { %v704_v57 = vsub.f32 0.0, %v696_v50  ;;  %v717_v63 = vmul.f32 1.442695, %v703_v52  ;;  %v2279_v7 = vpop.f32.mrf.mxu0  ;;  %v2301_v27 = vsub.f32 1.0, %v2277_v5  ;;  %v753_v31 = vmax.f32 %v745_v0, 0.0 }
 0x1f5   : > { %v1124_v42 = vmul.f32 1.442695, %v1113_v39  ;;  %1721 = vpow2.f32 %v1122_v41  ;;  %v754_v36 = vmax.f32 %v746_v10, 0.0  ;;  %v749_v39 = vsub.f32 0.0, %v2225_v17 }
 0x1f6   : > { %v1710_v40 = vpop.eup %1709  ;;  %v719_v16 = vmul.f32 1.442695, %v704_v57  ;;  %2621 = vst [vmem:[#allocation18_spill] sm:$0xff] %v2301_v27  ;;  %v2304_v34 = vpop.f32.mrf.mxu0  ;;  %v1107_v52 = vand.u32 2147483647, %v2279_v7 }
 0x1f7   : > { %v721_v45 = vadd.f32 1.0, %v1710_v40  ;;  %1723 = vpow2.f32 %v1124_v42  ;;  %2622 = vst [vmem:[#allocation19_spill] sm:$0xff] %v2304_v34  ;;  %v2307_v40 = vmax.f32 %v747_v19, 0.0  ;;  %v2319_v57 = vmax.f32 %v749_v39, 0.0 }
 0x1f8   : > { %v1712_v47 = vpop.eup %1711  ;;  %1725 = vpow2.f32 %v1120_v44  ;;  %v1108_v0 = vand.u32 2147483647, %v2304_v34 }
 0x1f9   : > { %1727 = vlog2.f32 %v721_v45  ;;  %v722_v51 = vadd.f32 1.0, %v1712_v47  ;;  %v2311_v45 = vmax.f32 %v748_v26, 0.0  ;;  %v1158_v47 = vsub.f32 0.0, %v2220_v13 }
 0x1fa   : > { %v1714_v54 = vpop.eup %1713  ;;  %1729 = vpow2.f32 %v715_v49  ;;  %v1106_v49 = vand.u32 2147483647, %v2246_v53 }
 0x1fb   : > { %1731 = vlog2.f32 %v722_v51  ;;  %v723_v3 = vadd.f32 1.0, %v1714_v54  ;;  %v2317_v54 = vpop.f32.mrf.mxu0  ;;  %v2324_v19 = vmax.f32 %v1158_v47, 0.0 }
 0x1fc   : > { %1733 = vpow2.f32 %v717_v63  ;;  %v1109_v26 = vand.u32 2147483647, %v2317_v54 }
 0x1fd   : > { %v1716_v8 = vpop.eup %1715  ;;  %1735 = vlog2.f32 %v723_v3 }
 0x1fe   : > { %v1718_v18 = vpop.eup %1717  ;;  %v724_v33 = vadd.f32 1.0, %v1716_v8  ;;  %1737 = vpow2.f32 %v719_v16  ;;  %v750_v16 = vsub.f32 0.0, %v2236_v30  ;;  %v1117_v42 = vsub.f32 0.0, %v1109_v26 }
 0x1ff   : > { %v1720_v24 = vpop.eup %1719  ;;  %v725_v37 = vadd.f32 1.0, %v1718_v18  ;;  %v2623_v26 = vmax.f32 %v2213_v6, 0.0 }
 0x200   : > { %v1134_v43 = vadd.f32 1.0, %v1720_v24  ;;  %1739 = vlog2.f32 %v724_v33  ;;  %v1114_v24 = vsub.f32 0.0, %v1106_v49  ;;  %v751_v33 = vsub.f32 0.0, %v2240_v38 }
 0x201   : > { %1741 = vlog2.f32 %v725_v37  ;;  %v2330_v47 = vmax.f32 %v750_v16, 0.0  ;;  %v1160_v49 = vsub.f32 0.0, %v2228_v20 }
 0x202   : > { %v1722_v29 = vpop.eup %1721  ;;  %1743 = vlog2.f32 %v1134_v43  ;;  %v1126_v10 = vmul.f32 1.442695, %v1114_v24 }
 0x203   : > { %v1136_v48 = vadd.f32 1.0, %v1722_v29  ;;  %v1159_v29 = vsub.f32 0.0, %v2223_v15  ;;  %v1168_v39 = vmax.f32 %v1160_v49, 0.0 }
 0x204   : > { %v1724_v35 = vpop.eup %1723 }
 0x205   : > { %v1726_v4 = vpop.eup %1725  ;;  %v1137_v51 = vadd.f32 1.0, %v1724_v35  ;;  %1745 = vlog2.f32 %v1136_v48  ;;  %v1115_v35 = vsub.f32 0.0, %v1107_v52  ;;  %v2334_v32 = vmax.f32 %v1159_v29, 0.0 }
 0x206   : > { %v1728_v44 = vpop.eup %1727  ;;  %v1135_v63 = vadd.f32 1.0, %v1726_v4  ;;  %v1116_v4 = vsub.f32 0.0, %v1108_v0  ;;  %v1132_v52 = vmul.f32 1.442695, %v1117_v42 }
 0x207   : > { %v1730_v3 = vpop.eup %1729  ;;  %v730_v8 = vmul.f32 0.6931472, %v1728_v44  ;;  %1747 = vlog2.f32 %v1137_v51  ;;  %v2336_v51 = vmax.f32 %v751_v33, 0.0  ;;  %v1161_v33 = vsub.f32 0.0, %v2234_v28 }
 0x208   : > { %v1732_v18 = vpop.eup %1731  ;;  %v726_v37 = vadd.f32 1.0, %v1730_v3  ;;  %1749 = vlog2.f32 %v1135_v63  ;;  %v1128_v63 = vmul.f32 1.442695, %v1115_v35  ;;  %v1130_v3 = vmul.f32 1.442695, %v1116_v4 }
 0x209   : > { %v761_v43 = vadd.f32 %v753_v31, %v730_v8  ;;  %v785_v44 = vadd.f32 %v777_v25, %v730_v8  ;;  %v732_v50 = vmul.f32 0.6931472, %v1732_v18  ;;  %v1734_v41 = vpop.eup %1733  ;;  %v752_v31 = vsub.f32 0.0, %v2242_v46 }
 0x20a   : > { %v1736_v0 = vpop.eup %1735  ;;  %1751 = vlog2.f32 %v726_v37  ;;  %v727_v48 = vadd.f32 1.0, %v1734_v41  ;;  %v1169_v49 = vmax.f32 %v1161_v33, 0.0  ;;  %v1193_v41 = vmax.f32 %v2234_v28, 0.0 }
 0x20b   : > { %v1738_v8 = vpop.eup %1737  ;;  %v769_v16 = vmin.f32 %v761_v43, 100.0  ;;  %v793_v18 = vmin.f32 %v785_v44, 100.0  ;;  %v762_v24 = vadd.f32 %v754_v36, %v732_v50  ;;  %v786_v29 = vadd.f32 %v2623_v26, %v732_v50 }
 0x20c   : > { %1753 = vpow2.f32 %v1126_v10  ;;  %v734_v35 = vmul.f32 0.6931472, %v1736_v0  ;;  %v728_v27 = vadd.f32 1.0, %v1738_v8  ;;  %v2345_v4 = vmax.f32 %v752_v31, 0.0 }
 0x20d   : > { %1755 = vpow2.f32 %v1128_v63  ;;  %v1740_v25 = vpop.eup %1739  ;;  %v1162_v43 = vsub.f32 0.0, %v2246_v53  ;;  %v801_v6 = vmul.f32 %v769_v16, %v2249_v55  ;;  %v817_v50 = vmul.f32 %v2271_v1, %v793_v18 }
 0x20e   : > { %1757 = vpow2.f32 %v1130_v3  ;;  %v1742_v36 = vpop.eup %1741  ;;  %v770_v44 = vmin.f32 %v762_v24, 100.0  ;;  %v794_v10 = vmin.f32 %v786_v29, 100.0  ;;  %v1163_v63 = vsub.f32 0.0, %v2279_v7 }
 0x20f   : > { %v1744_v42 = vpop.eup %1743  ;;  %1759 = vpow2.f32 %v1132_v52  ;;  %v763_v31 = vadd.f32 %v2307_v40, %v734_v35  ;;  %v2624_v8 = vmax.f32 %v2216_v9, 0.0  ;;  %v736_v26 = vmul.f32 0.6931472, %v1740_v25 }
 0x210   : > { %1761 = vlog2.f32 %v727_v48  ;;  %v2355_v18 = vmax.f32 %v1162_v43, 0.0  ;;  %v1164_v29 = vsub.f32 0.0, %v2304_v34  ;;  %v2359_v33 = vadd.f32 %v817_v50, %v801_v6 }
 0x211   : > { %v787_v3 = vadd.f32 %v2624_v8, %v734_v35  ;;  %1763 = vlog2.f32 %v728_v27  ;;  %v802_v52 = vmul.f32 %v770_v44, %v2252_v56  ;;  %v818_v40 = vmul.f32 %v2274_v2, %v794_v10 }
 0x212   : > { %v1746_v0 = vpop.eup %1745  ;;  %2625 = vst [vmem:[#allocation20_spill] sm:$0xff] %v2355_v18  ;;  %v1143_v37 = vmul.f32 0.6931472, %v1744_v42  ;;  %v738_v9 = vmul.f32 0.6931472, %v1742_v36  ;;  %v2363_v25 = vmax.f32 %v1163_v63, 0.0  ;;  %v764_v8 = vadd.f32 %v2311_v45, %v736_v26 }
 0x213   : > { %v1147_v35 = vmul.f32 0.6931472, %v1746_v0  ;;  %v771_v48 = vmin.f32 %v763_v31, 100.0  ;;  %v795_v43 = vmin.f32 %v787_v3, 100.0  ;;  %v2626_v53 = vmax.f32 %v2218_v12, 0.0 }
 0x214   : > { %v1748_v16 = vpop.eup %1747  ;;  %v2369_v18 = vmax.f32 %v1164_v29, 0.0  ;;  %v2373_v42 = vadd.f32 %v818_v40, %v802_v52  ;;  %v1174_v63 = vadd.f32 %v2324_v19, %v1143_v37  ;;  %v2627_v0 = vmax.f32 %v2220_v13, 0.0 }
 0x215   : > { %v1750_v28 = vpop.eup %1749  ;;  %v1149_v24 = vmul.f32 0.6931472, %v1748_v16  ;;  %v788_v6 = vadd.f32 %v2626_v53, %v736_v26  ;;  %v765_v45 = vadd.f32 %v2319_v57, %v738_v9  ;;  %v2628_v12 = vmax.f32 %v2225_v17, 0.0 }
 0x216   : > { %v1145_v50 = vmul.f32 0.6931472, %v1750_v28  ;;  %v1198_v31 = vadd.f32 %v2627_v0, %v1143_v37  ;;  %v1176_v3 = vadd.f32 %v1168_v39, %v1147_v35  ;;  %v2629_v26 = vmax.f32 %v2228_v20, 0.0 }
 0x217   : > { %v1752_v10 = vpop.eup %1751  ;;  %v789_v53 = vadd.f32 %v2628_v12, %v738_v9  ;;  %v803_v28 = vmul.f32 %v771_v48, %v2255_v58  ;;  %v819_v52 = vmul.f32 %v2283_v11, %v795_v43  ;;  %v772_v40 = vmin.f32 %v764_v8, 100.0 }
 0x218   : > { %v1200_v16 = vadd.f32 %v2629_v26, %v1147_v35  ;;  %v1177_v44 = vadd.f32 %v1169_v49, %v1149_v24  ;;  %v740_v27 = vmul.f32 0.6931472, %v1752_v10  ;;  %v1175_v13 = vadd.f32 %v2334_v32, %v1145_v50 }
 0x219   : > { %v1754_v29 = vpop.eup %1753  ;;  %v2630_v57 = vmax.f32 %v2223_v15, 0.0  ;;  %v1201_v17 = vadd.f32 %v1193_v41, %v1149_v24  ;;  %v834_v39 = vsub.f32 0.0, %v2373_v42  ;;  %v796_v20 = vmin.f32 %v788_v6, 100.0 }
 0x21a   : > { %v1756_v19 = vpop.eup %1755  ;;  %v1182_v35 = vmin.f32 %v1174_v63, 100.0  ;;  %v1206_v0 = vmin.f32 %v1198_v31, 100.0  ;;  %v773_v12 = vmin.f32 %v765_v45, 100.0  ;;  %v797_v48 = vmin.f32 %v789_v53, 100.0 }
 0x21b   : > { %v1199_v37 = vadd.f32 %v2630_v57, %v1145_v50  ;;  %v1758_v9 = vpop.eup %1757  ;;  %v1184_v26 = vmin.f32 %v1176_v3, 100.0  ;;  %v1208_v43 = vmin.f32 %v1200_v16, 100.0  ;;  %v2389_v49 = vadd.f32 %v819_v52, %v803_v28 }
 0x21c   : > { %v1760_v8 = vpop.eup %1759  ;;  %v1185_v10 = vmin.f32 %v1177_v44, 100.0  ;;  %v1209_v36 = vmin.f32 %v1201_v17, 100.0  ;;  %v1138_v32 = vadd.f32 1.0, %v1754_v29  ;;  %v766_v15 = vadd.f32 %v2330_v47, %v740_v27 }
 0x21d   : > { %v1762_v34 = vpop.eup %1761  ;;  %v1183_v41 = vmin.f32 %v1175_v13, 100.0  ;;  %v1207_v24 = vmin.f32 %v1199_v37, 100.0  ;;  %v1139_v50 = vadd.f32 1.0, %v1756_v19  ;;  %v1214_v6 = vmul.f32 %v1182_v35, %v2249_v55 }
 0x21e   : > { %v1764_v57 = vpop.eup %1763  ;;  %v1222_v63 = vmul.f32 %v1206_v0, %v2271_v1  ;;  %v2631_v31 = vmax.f32 %v2236_v30, 0.0  ;;  %v1140_v53 = vadd.f32 1.0, %v1758_v9  ;;  %v1216_v3 = vmul.f32 %v1184_v26, %v2255_v58 }
 0x21f   : > { %v1224_v44 = vmul.f32 %v1208_v43, %v2283_v11  ;;  %1765 = vlog2.f32 %v1138_v32  ;;  %v1141_v16 = vadd.f32 1.0, %v1760_v8  ;;  %v742_v29 = vmul.f32 0.6931472, %v1762_v34 }
 0x220   : > { %v790_v45 = vadd.f32 %v2631_v31, %v740_v27  ;;  %v1217_v47 = vmul.f32 %v1185_v10, %v2258_v59  ;;  %v1225_v28 = vmul.f32 %v1209_v36, %v2286_v14  ;;  %1767 = vlog2.f32 %v1139_v50 }
 0x221   : > { %v804_v52 = vmul.f32 %v772_v40, %v2258_v59  ;;  %v820_v19 = vmul.f32 %v2286_v14, %v796_v20  ;;  %v1215_v30 = vmul.f32 %v1183_v41, %v2252_v56  ;;  %v1223_v27 = vmul.f32 %v1207_v24, %v2274_v2 }
 0x222   : > { %v805_v13 = vmul.f32 %v773_v12, %v2261_v60  ;;  %v2405_v37 = vadd.f32 %v1222_v63, %v1214_v6  ;;  %v744_v17 = vmul.f32 0.6931472, %v1764_v57  ;;  %1769 = vlog2.f32 %v1140_v53 }
 0x223   : > { %v774_v34 = vmin.f32 %v766_v15, 100.0  ;;  %v798_v9 = vmin.f32 %v790_v45, 100.0  ;;  %v2407_v35 = vadd.f32 %v1224_v44, %v1216_v3  ;;  %1771 = vlog2.f32 %v1141_v16 }
 0x224   : > { %v821_v36 = vmul.f32 %v2290_v21, %v797_v48  ;;  %v767_v40 = vadd.f32 %v2336_v51, %v742_v29  ;;  %v2632_v20 = vmax.f32 %v2240_v38, 0.0  ;;  %v2413_v26 = vadd.f32 %v1225_v28, %v1217_v47 }
 0x225   : > { %v835_v12 = vsub.f32 0.0, %v2389_v49  ;;  %v2416_v43 = vadd.f32 %v820_v19, %v804_v52  ;;  %v2418_v8 = vadd.f32 %v1223_v27, %v1215_v30  ;;  %v1165_v10 = vsub.f32 0.0, %v2317_v54 }
 0x226   : > { %v791_v0 = vadd.f32 %v2632_v20, %v742_v29  ;;  %v2633_v32 = vsub.f32 0.0, %v2359_v33  ;;  %v1238_v48 = vsub.f32 0.0, %v2405_v37  ;;  %v768_v51 = vadd.f32 %v2345_v4, %v744_v17  ;;  %v2635_v20 = vld [vmem:[#allocation18_spill] sm:$0xff] }
 0x227   : > { %v2634_v38 = vmax.f32 %v2242_v46, 0.0  ;;  %v843_v24 = vmul.f32 1.442695, %v834_v39  ;;  %v806_v50 = vmul.f32 %v774_v34, %v2264_v61  ;;  %v822_v57 = vmul.f32 %v2293_v22, %v798_v9 }
 0x228   : > { %v841_v15 = vmul.f32 1.442695, %v2633_v32  ;;  %v1240_v6 = vsub.f32 0.0, %v2407_v35  ;;  %v2430_v63 = vadd.f32 %v821_v36, %v805_v13  ;;  %v775_v31 = vmin.f32 %v767_v40, 100.0 }
 0x229   : > { %v792_v41 = vadd.f32 %v2634_v38, %v744_v17  ;;  %v799_v45 = vmin.f32 %v791_v0, 100.0  ;;  %v1241_v53 = vsub.f32 0.0, %v2413_v26  ;;  %v845_v3 = vmul.f32 1.442695, %v835_v12 }
 0x22a   : > { %v836_v44 = vsub.f32 0.0, %v2416_v43  ;;  %v1239_v4 = vsub.f32 0.0, %v2418_v8  ;;  %v1197_v46 = vmax.f32 %v2317_v54, 0.0  ;;  %1773 = vpow2.f32 %v841_v15  ;;  %v2636_v15 = vld [vmem:[#allocation20_spill] sm:$0xff] }
 0x22b   : > { %v1246_v39 = vmul.f32 1.442695, %v1238_v48  ;;  %v776_v16 = vmin.f32 %v768_v51, 100.0  ;;  %v800_v29 = vmin.f32 %v792_v41, 100.0  ;;  %1775 = vpow2.f32 %v843_v24  ;;  %v2637_v51 = vld [vmem:[#allocation17_spill] sm:$0xff] }
 0x22c   : > { %v2436_v47 = vadd.f32 %v822_v57, %v806_v50  ;;  %v1250_v28 = vmul.f32 1.442695, %v1240_v6  ;;  %v1173_v52 = vmax.f32 %v1165_v10, 0.0  ;;  %v1766_v19 = vpop.eup %1765  ;;  %v837_v30 = vsub.f32 0.0, %v2430_v63 }
 0x22d   : > { %v807_v27 = vmul.f32 %v775_v31, %v2267_v62  ;;  %v823_v13 = vmul.f32 %v2296_v23, %v799_v45  ;;  %v1252_v17 = vmul.f32 1.442695, %v1241_v53  ;;  %v1768_v34 = vpop.eup %1767  ;;  %1777 = vpow2.f32 %v845_v3 }
 0x22e   : > { %v847_v54 = vmul.f32 1.442695, %v836_v44  ;;  %v1248_v9 = vmul.f32 1.442695, %v1239_v4  ;;  %v1151_v36 = vmul.f32 0.6931472, %v1766_v19  ;;  %1779 = vpow2.f32 %v1246_v39 }
 0x22f   : > { %v808_v40 = vmul.f32 %v776_v16, %v2277_v5  ;;  %v824_v0 = vmul.f32 %v2635_v20, %v800_v29  ;;  %v1153_v12 = vmul.f32 0.6931472, %v1768_v34  ;;  %v1770_v10 = vpop.eup %1769  ;;  %v838_v32 = vsub.f32 0.0, %v2436_v47 }
 0x230   : > { %1781 = vpow2.f32 %v1250_v28  ;;  %v1178_v48 = vadd.f32 %v2636_v15, %v1151_v36  ;;  %v2638_v38 = vmax.f32 %v2637_v51, 0.0  ;;  %v1772_v24 = vpop.eup %1771  ;;  %v2447_v50 = vadd.f32 %v823_v13, %v807_v27 }
 0x231   : > { %1783 = vpow2.f32 %v1252_v17  ;;  %v1179_v57 = vadd.f32 %v2363_v25, %v1153_v12  ;;  %v2639_v6 = vmax.f32 %v2279_v7, 0.0  ;;  %v1155_v3 = vmul.f32 0.6931472, %v1770_v10 }
 0x232   : > { %v1202_v41 = vadd.f32 %v2638_v38, %v1151_v36  ;;  %1785 = vpow2.f32 %v1248_v9  ;;  %v1186_v45 = vmin.f32 %v1178_v48, 100.0  ;;  %v2452_v44 = vadd.f32 %v824_v0, %v808_v40  ;;  %v2640_v9 = vld [vmem:[#allocation19_spill] sm:$0xff] }
 0x233   : > { %v1203_v31 = vadd.f32 %v2639_v6, %v1153_v12  ;;  %v1187_v4 = vmin.f32 %v1179_v57, 100.0  ;;  %v1157_v16 = vmul.f32 0.6931472, %v1772_v24  ;;  %1787 = vpow2.f32 %v847_v54 }
 0x234   : > { %v1210_v53 = vmin.f32 %v1202_v41, 100.0  ;;  %v849_v29 = vmul.f32 1.442695, %v837_v30  ;;  %v1218_v28 = vmul.f32 %v1186_v45, %v2261_v60  ;;  %v851_v27 = vmul.f32 1.442695, %v838_v32 }
 0x235   : > { %v1211_v39 = vmin.f32 %v1203_v31, 100.0  ;;  %v1219_v25 = vmul.f32 %v1187_v4, %v2264_v61  ;;  %v1180_v13 = vadd.f32 %v2369_v18, %v1155_v3  ;;  %v839_v17 = vsub.f32 0.0, %v2447_v50 }
 0x236   : > { %v1226_v19 = vmul.f32 %v1210_v53, %v2290_v21  ;;  %v2641_v36 = vmax.f32 %v2640_v9, 0.0  ;;  %v1181_v54 = vadd.f32 %v1173_v52, %v1157_v16  ;;  %v840_v30 = vsub.f32 0.0, %v2452_v44 }
 0x237   : > { %v1227_v7 = vmul.f32 %v1211_v39, %v2293_v22  ;;  %v1188_v12 = vmin.f32 %v1180_v13, 100.0  ;;  %v1205_v10 = vadd.f32 %v1197_v46, %v1157_v16  ;;  %v2467_v32 = vpop.eup %1773  ;;  %1789 = vpow2.f32 %v849_v29 }
 0x238   : > { %v2460_v34 = vadd.f32 %v1226_v19, %v1218_v28  ;;  %v1204_v40 = vadd.f32 %v2641_v36, %v1155_v3  ;;  %v1189_v48 = vmin.f32 %v1181_v54, 100.0  ;;  %v2470_v51 = vpop.eup %1775  ;;  %1791 = vpow2.f32 %v851_v27 }
 0x239   : > { %v2465_v0 = vadd.f32 %v1227_v7, %v1219_v25  ;;  %v1220_v52 = vmul.f32 %v1188_v12, %v2267_v62  ;;  %v1213_v41 = vmin.f32 %v1205_v10, 100.0  ;;  %v853_v24 = vmul.f32 1.442695, %v839_v17 }
 0x23a   : > { %v1242_v15 = vsub.f32 0.0, %v2460_v34  ;;  %v1212_v18 = vmin.f32 %v1204_v40, 100.0  ;;  %v1221_v46 = vmul.f32 %v1189_v48, %v2277_v5  ;;  %v2476_v31 = vpop.eup %1777  ;;  %v855_v45 = vmul.f32 1.442695, %v840_v30 }
 0x23b   : > { %v1243_v38 = vsub.f32 0.0, %v2465_v0  ;;  %v1229_v3 = vmul.f32 %v1213_v41, %v2635_v20  ;;  %v1780_v4 = vpop.eup %1779  ;;  %v1302_v25 = vmul.f32 0.25, %v2249_v55  ;;  %v1310_v7 = vmul.f32 0.75, %v2271_v1 }
 0x23c   : > { %v1254_v57 = vmul.f32 1.442695, %v1242_v15  ;;  %v1228_v6 = vmul.f32 %v1212_v18, %v2296_v23  ;;  %v1303_v17 = vmul.f32 0.25, %v2252_v56  ;;  %v1311_v9 = vmul.f32 0.75, %v2274_v2 }
 0x23d   : > { %v1256_v53 = vmul.f32 1.442695, %v1243_v38  ;;  %v1782_v16 = vpop.eup %1781  ;;  %v2481_v29 = vadd.f32 %v1229_v3, %v1221_v46  ;;  %v1304_v30 = vmul.f32 0.25, %v2255_v58  ;;  %v1312_v12 = vmul.f32 0.75, %v2283_v11 }
 0x23e   : > { %1793 = vpow2.f32 %v1254_v57  ;;  %v2479_v39 = vadd.f32 %v1228_v6, %v1220_v52  ;;  %v1784_v28 = vpop.eup %1783  ;;  %v1264_v36 = vsub.f32 1.0, %v1782_v16  ;;  %v1305_v55 = vmul.f32 0.25, %v2258_v59 }
 0x23f   : > { %1795 = vpow2.f32 %v1256_v53  ;;  %v1786_v27 = vpop.eup %1785  ;;  %v1245_v13 = vsub.f32 0.0, %v2481_v29  ;;  %v1265_v10 = vsub.f32 1.0, %v1784_v28  ;;  %v1313_v1 = vmul.f32 0.75, %v2286_v14 }
 0x240   : > { %1797 = vpow2.f32 %v853_v24  ;;  %v1244_v19 = vsub.f32 0.0, %v2479_v39  ;;  %v1788_v54 = vpop.eup %1787  ;;  %v1262_v18 = vsub.f32 1.0, %v1780_v4  ;;  %v1306_v48 = vmul.f32 0.25, %v2261_v60 }
 0x241   : > { %1799 = vpow2.f32 %v855_v45  ;;  %v1260_v15 = vmul.f32 1.442695, %v1245_v13  ;;  %v1314_v56 = vmul.f32 0.75, %v2290_v21  ;;  %v1263_v2 = vsub.f32 1.0, %v1786_v27 }
 0x242   : > { %v1258_v40 = vmul.f32 1.442695, %v1244_v19  ;;  %v857_v38 = vsub.f32 1.0, %v2467_v32  ;;  %v2496_v52 = vadd.f32 %v1310_v7, %v1302_v25  ;;  %v1307_v58 = vmul.f32 0.25, %v2264_v61 }
 0x243   : > { %v1272_v11 = vmul.f32 %v1264_v36, %v1264_v36  ;;  %v858_v59 = vsub.f32 1.0, %v2470_v51  ;;  %v1315_v14 = vmul.f32 0.75, %v2293_v22  ;;  %v2501_v24 = vadd.f32 %v1311_v9, %v1303_v17 }
 0x244   : > { %1801 = vpow2.f32 %v1258_v40  ;;  %v1790_v41 = vpop.eup %1789  ;;  %v1273_v57 = vmul.f32 %v1265_v10, %v1265_v10  ;;  %v859_v21 = vsub.f32 1.0, %v2476_v31  ;;  %v1270_v6 = vmul.f32 %v1262_v18, %v1262_v18 }
 0x245   : > { %1803 = vpow2.f32 %v1260_v15  ;;  %v1792_v60 = vpop.eup %1791  ;;  %v2505_v46 = vmul.f32 0.25, %v2267_v62  ;;  %v2508_v32 = vmul.f32 0.75, %v2296_v23  ;;  %v860_v61 = vsub.f32 1.0, %v1788_v54 }
 0x246   : > { %v1271_v45 = vmul.f32 %v1263_v2, %v1263_v2  ;;  %v1320_v53 = vadd.f32 %v1312_v12, %v1304_v30  ;;  %v1309_v51 = vmul.f32 0.25, %v2277_v5  ;;  %v865_v3 = vmul.f32 %v857_v38, %v857_v38 }
 0x247   : > { %v861_v22 = vsub.f32 1.0, %v1790_v41  ;;  %v1280_v4 = vmul.f32 %v1272_v11, %v2407_v35  ;;  %v1317_v16 = vmul.f32 0.75, %v2635_v20  ;;  %v866_v31 = vmul.f32 %v858_v59, %v858_v59 }
 0x248   : > { %v862_v19 = vsub.f32 1.0, %v1792_v60  ;;  %v1281_v62 = vmul.f32 %v1273_v57, %v2413_v26  ;;  %v1321_v27 = vadd.f32 %v1313_v1, %v1305_v55  ;;  %v867_v23 = vmul.f32 %v859_v21, %v859_v21 }
 0x249   : > { %v1278_v7 = vmul.f32 %v1270_v6, %v2405_v37  ;;  %v1322_v17 = vadd.f32 %v1314_v56, %v1306_v48  ;;  %v868_v5 = vmul.f32 %v860_v61, %v860_v61  ;;  %v1279_v36 = vmul.f32 %v1271_v45, %v2418_v8 }
 0x24a   : > { %v1323_v35 = vadd.f32 %v1315_v14, %v1307_v58  ;;  %v873_v20 = vmul.f32 %v865_v3, %v2359_v33  ;;  %v869_v30 = vmul.f32 %v861_v22, %v861_v22  ;;  %v1288_v12 = vmul.f32 0.4, %v1280_v4 }
 0x24b   : > { %v1794_v28 = vpop.eup %1793  ;;  %v874_v26 = vmul.f32 %v866_v31, %v2373_v42  ;;  %v870_v15 = vmul.f32 %v862_v19, %v862_v19  ;;  %v1289_v55 = vmul.f32 0.4, %v1281_v62  ;;  %v875_v37 = vmul.f32 %v867_v23, %v2389_v49 }
 0x24c   : > { %v1796_v25 = vpop.eup %1795  ;;  %v1266_v13 = vsub.f32 1.0, %v1794_v28  ;;  %v1286_v18 = vmul.f32 0.4, %v1278_v7  ;;  %v876_v2 = vmul.f32 %v868_v5, %v2416_v43  ;;  %v1287_v38 = vmul.f32 0.4, %v1279_v36 }
 0x24d   : > { %v1798_v9 = vpop.eup %1797  ;;  %v1267_v40 = vsub.f32 1.0, %v1796_v25  ;;  %v877_v41 = vmul.f32 %v869_v30, %v2430_v63  ;;  %v1296_v42 = vadd.f32 %v1288_v12, %v875_v37  ;;  %v878_v49 = vmul.f32 %v870_v15, %v2436_v47 }
 0x24e   : > { %v1800_v54 = vpop.eup %1799  ;;  %v1274_v10 = vmul.f32 %v1266_v13, %v1266_v13  ;;  %v863_v48 = vsub.f32 1.0, %v1798_v9  ;;  %v1297_v57 = vadd.f32 %v1289_v55, %v876_v2  ;;  %v1295_v45 = vadd.f32 %v1287_v38, %v874_v26 }
 0x24f   : > { %v1275_v1 = vmul.f32 %v1267_v40, %v1267_v40  ;;  %v864_v58 = vsub.f32 1.0, %v1800_v54  ;;  %v1344_v4 = vmul.f32 %v1320_v53, %v1296_v42  ;;  %v1325_v19 = vadd.f32 %v1317_v16, %v1309_v51 }
 0x250   : > { %v1282_v56 = vmul.f32 %v1274_v10, %v2460_v34  ;;  %v1294_v34 = vadd.f32 %v1286_v18, %v873_v20  ;;  %v871_v6 = vmul.f32 %v863_v48, %v863_v48  ;;  %v1345_v28 = vmul.f32 %v1321_v27, %v1297_v57 }
 0x251   : > { %v1802_v8 = vpop.eup %1801  ;;  %v1283_v33 = vmul.f32 %v1275_v1, %v2465_v0  ;;  %v872_v3 = vmul.f32 %v864_v58, %v864_v58  ;;  %v1324_v47 = vadd.f32 %v2508_v32, %v2505_v46  ;;  %v1343_v13 = vmul.f32 %v2501_v24, %v1295_v45 }
 0x252   : > { %v1804_v11 = vpop.eup %1803  ;;  %v1290_v59 = vmul.f32 0.4, %v1282_v56  ;;  %v1268_v14 = vsub.f32 1.0, %v1802_v8  ;;  %v1342_v62 = vmul.f32 %v2496_v52, %v1294_v34  ;;  %v879_v25 = vmul.f32 %v871_v6, %v2447_v50 }
 0x253   : > { %v1291_v60 = vmul.f32 0.4, %v1283_v33  ;;  %v1269_v21 = vsub.f32 1.0, %v1804_v11  ;;  %v880_v53 = vmul.f32 %v872_v3, %v2452_v44  ;;  %v1359_v51 = vadd.f32 %v1345_v28, %v1343_v13 }
 0x254   : > { %v1298_v61 = vadd.f32 %v1290_v59, %v877_v41  ;;  %v1276_v43 = vmul.f32 %v1268_v14, %v1268_v14  ;;  %v1358_v5 = vadd.f32 %v1344_v4, %v1342_v62 }
 0x255   : > { %v1299_v22 = vadd.f32 %v1291_v60, %v878_v49  ;;  %v1277_v0 = vmul.f32 %v1269_v21, %v1269_v21 }
 0x256   : > { %v1284_v63 = vmul.f32 %v1276_v43, %v2479_v39  ;;  %v1346_v23 = vmul.f32 %v1322_v17, %v1298_v61 }
 0x257   : > { %v1285_v31 = vmul.f32 %v1277_v0, %v2481_v29  ;;  %v1347_v39 = vmul.f32 %v1323_v35, %v1299_v22 }
 0x258   : > { %v1292_v7 = vmul.f32 0.4, %v1284_v63  ;;  %v1360_v46 = vadd.f32 %v1358_v5, %v1346_v23 }
 0x259   : > { %v1293_v9 = vmul.f32 0.4, %v1285_v31  ;;  %v1361_v52 = vadd.f32 %v1359_v51, %v1347_v39 }
 0x25a   : > { %v1300_v27 = vadd.f32 %v1292_v7, %v879_v25 }
 0x25b   : > { %v1301_v29 = vadd.f32 %v1293_v9, %v880_v53 }
 0x25c   : > { %v1348_v16 = vmul.f32 %v1324_v47, %v1300_v27 }
 0x25d   : > { %v1349_v50 = vmul.f32 %v1325_v19, %v1301_v29 }
 0x25e   : > { %v1362_v32 = vadd.f32 %v1360_v46, %v1348_v16 }
 0x25f   : > { %v1363_v17 = vadd.f32 %v1361_v52, %v1349_v50 }
 0x260   : > { %1375 = vst [vmem:[%s422_s18] sm:$0xff] %v1362_v32 }
 0x261   : > { %1376 = vst [vmem:[%s422_s18 + $0x8] sm:$0xff] %v1363_v17 }
 0x262   : > { %1898 = shalt.err (!%p1895_p8)
}
 0x263   : > { %s1899_s22 = scalar_lea.hbm %s2537_s5, 256  ;;  %s1903_s30 = scalar_lea.hbm %s2642_s12, 512 }
 0x264   : > { %p1900_p0 = scmp.ne.s32.totalorder %s2537_s5, %s1899_s22  ;;  %p1904_p11 = scmp.lt.s32.totalorder %s2537_s5, %s2642_s12 }
 0x265   : > { %p1905_p5 = scmp.lt.s32.totalorder %s1903_s30, %s1899_s22 }
 0x266   : > { %p1901_p9 = pnand %p1900_p0, %p2643_p2 }
 0x267   : > { %p1906_p12 = por %p1905_p5, %p1904_p11 }
 0x268   : > { %p1902_p7 = pneg %p1901_p9 }
 0x26a   : > { %p1907_p6 = pnand %p1906_p12, %p1902_p7 }
 0x26c   : > { %1910 = shalt.err (!%p1907_p6)
}
 0x26d   : > { %1633 = dma.vmem_to_hbm [thread:$0]  (%p2643_p2), %s1395_s10, 256, %s2537_s5, %s1378_s7  }
 0x26e PF: > { %s2644_s9 = sld [smem:[#allocation14_spill]] }
 0x26f   : > { %s2645_s13 = sld [smem:[#allocation16_spill]] }
 0x270   : > { %s2646_s14 = sld [smem:[#allocation15_spill]] }
 0x274   : > { %s1406_s18 = sand.u32 1, %s2644_s9  }
 0x275   : > { %p2647_p13 = scmp.ne.s32.totalorder %s2645_s13, 0  ;;  %s1407_s16 = scalar_lea.sflag [#allocation5], %s1406_s18 }
 0x276   : > { %p2648_p4 = scmp.ge.s32.totalorder %s2646_s14, 2 }
 0x278   : > { %p1647_p1 = pnand %p2648_p4, %p2647_p13 }
 0x27a   : > { %p1648_p3 = pneg %p1647_p1 }
 0x27c   : > { %1948 = dma.done.wait (%p1648_p3), %s1407_s16, 256  }
 0x27d   : > { %1950 = vsyncadd (%p1648_p3), %s1407_s16, 4294967040  ;;  %s22_s29 = sadd.s32 1, %s2646_s14   ;;  %s2649_s24 = smov %s1957_s25 }
 0x27e   : > { %p19_p10 = scmp.ge.s32.totalorder %s22_s29, 4   ;;  %s2650_s25 = smov %s1961_s26 }
 0x27f   : > { %s2651_s26 = smov %s2140_s19  ;;  %s2652_s27 = smov %s1969_s28 }
 0x280   : > { %s2653_s28 = smov %s2655_s20  ;;  %21 = sbr.rel (!%p19_p10) target bundleno = 10 (0xa), region = 120 }
 0x285   :  { %1412 = vsyncpa [#allocation4], 1 }
 0x286   :  { %1414 = vsyncpa [#allocation4 + $0x1], 1 }
 0x287   :  { %1415 = vsyncpa [#allocation7], 1 }
 0x288   :  { %1416 = vsyncpa [#allocation5], 1 }
 0x289   :  { %1418 = vsyncpa [#allocation5 + $0x1], 1 }

</bundles_post_ra>
